<compile_context>
chip_gen: v6e
topology: v6e:2x2x1
jax: 0.10.0
libtpu: 0.0.40
codegen_flags: <defaults>
</compile_context>

<pallas_src>
import math

import numpy as np
import jax
import jax.numpy as jnp
from jax.experimental import pallas as pl
from jax.experimental.pallas import tpu as pltpu

EMBED_DIM = 128
NUM_EMBEDDINGS = 50       # stands in for df.item_id.max() + 10
RATIO = 0.8               # TopKPooling ratio
B_PAD = 8                 # graphs padded to one sublane tile
NODE_ALIGN = 128          # node-count bucket (lane width, multiple of 8)


# ------------------------------ Pallas kernels ------------------------------

def _sage_topk_kernel(a_ref, xk_ref, xi_ref, kcol_ref, wcat_ref, b_ref, wp_ref,
                      h_ref, s_ref, acc_ref, deg_ref, cat_ref):
    """Fused mean-SAGEConv + ReLU + TopKPooling score over one immutable A.

    grid = (row tiles of A : "parallel", A-column / X-row tiles : "arbitrary")

    Per (tm, tk) block:
      acc += A_blk @ X_blk                     (MXU, f32 accumulation)
      deg += sum(A_blk * keep_col, -1)         (VPU mul + XLU reduce; free slots)
    Epilogue (last k):
      agg = acc / max(deg, 1)                  (masked mean aggregation)
      h   = relu([agg | x_root] @ Wcat + b)    (single K=256 MXU pass, staged into
                                                a bf16 scratch — no concat copy)
      s   = tanh(sum(h * w_pool_hat, -1))      (TopKPooling gate)
    """
    k = pl.program_id(1)

    @pl.when(k == 0)
    def _():
        acc_ref[...] = jnp.zeros_like(acc_ref)
        deg_ref[...] = jnp.zeros_like(deg_ref)

    a = a_ref[...]
    acc_ref[...] += jnp.dot(a, xk_ref[...], preferred_element_type=jnp.float32)
    # masked in-degree on the (otherwise idle) VPU/XLU slots
    deg_ref[...] += jnp.sum((a * kcol_ref[...]).astype(jnp.float32),
                            axis=-1, keepdims=True)

    @pl.when(k == pl.num_programs(1) - 1)
    def _():
        inv_deg = pl.reciprocal(jnp.maximum(deg_ref[...], 1.0), approx=True)
        # stage [agg | x_root] into a preallocated bf16 scratch (tile-aligned
        # static slices; avoids the jnp.concatenate relayout copy per row tile)
        cat_ref[:, 0:EMBED_DIM] = (acc_ref[...] * inv_deg).astype(jnp.bfloat16)
        cat_ref[:, EMBED_DIM:2 * EMBED_DIM] = xi_ref[...]
        h = jnp.dot(cat_ref[...], wcat_ref[...],
                    preferred_element_type=jnp.float32) + b_ref[...]
        h = jnp.maximum(h, 0.0)                               # bias + ReLU in f32
        h_ref[...] = h.astype(h_ref.dtype)                    # bf16 write-back
        # TopK score: VPU multiply + lane reduce + EUP tanh (no 1-wide matvec)
        s_ref[...] = jnp.tanh(jnp.sum(h * wp_ref[...], axis=-1, keepdims=True))


def _pick_tiles(n):
    def biggest(cands):
        for c in cands:
            if n % c == 0:
                return c
        return 128
    tk = biggest((2048, 1024, 512, 256, 128))
    tm = biggest((512, 256, 128))
    # keep >= 2 row tiles so the "parallel" axis actually shards across the two
    # v7x TensorCores (megacore); at n=128 the grid is (1,1) regardless.
    while tm > 128 and n // tm < 2:
        tm //= 2
    return tm, tk


def _vmem_limit_bytes(tm, tk):
    bf, f4 = 2, 4
    need = (2 * tm * tk * bf                      # A blocks (double-buffered)
            + 2 * tk * EMBED_DIM * bf             # X (source) blocks
            + 2 * tm * EMBED_DIM * bf             # X (root) blocks
            + 2 * tk * bf                         # keep-column blocks
            + 2 * 2 * EMBED_DIM * EMBED_DIM * bf  # Wcat
            + 4 * EMBED_DIM * f4                  # bias + pool weight
            + 2 * tm * EMBED_DIM * bf             # h out blocks
            + 2 * tm * f4                         # score out blocks
            + tm * EMBED_DIM * f4                 # f32 accumulator
            + tm * f4                             # masked-degree accumulator
            + tm * 2 * EMBED_DIM * bf)            # bf16 staging scratch
    # generous headroom, capped below v7x's smaller scoped-VMEM budget (~48 MiB)
    return int(min(max(2 * need, 16 * 1024 * 1024), 48 * 1024 * 1024))


def sage_conv_topk_score(a_bf16, x_bf16, keepcol_bf16, wcat, b, wp_hat):
    """relu(SAGEConv(x)) (bf16) and its TopKPooling score, one fused pallas_call."""
    n = a_bf16.shape[0]
    tm, tk = _pick_tiles(n)
    grid = (n // tm, n // tk)
    return pl.pallas_call(
        _sage_topk_kernel,
        out_shape=(jax.ShapeDtypeStruct((n, EMBED_DIM), jnp.bfloat16),
                   jax.ShapeDtypeStruct((n, 1), jnp.float32)),
        grid_spec=pltpu.PrefetchScalarGridSpec(
            num_scalar_prefetch=0,
            grid=grid,
            in_specs=[
                pl.BlockSpec((tm, tk), lambda i, k: (i, k)),               # A
                pl.BlockSpec((tk, EMBED_DIM), lambda i, k: (k, 0)),        # X (src)
                pl.BlockSpec((tm, EMBED_DIM), lambda i, k: (i, 0)),        # X (root)
                pl.BlockSpec((1, tk), lambda i, k: (0, k)),                # keep cols
                pl.BlockSpec((2 * EMBED_DIM, EMBED_DIM), lambda i, k: (0, 0)),
                pl.BlockSpec((1, EMBED_DIM), lambda i, k: (0, 0)),         # bias
                pl.BlockSpec((1, EMBED_DIM), lambda i, k: (0, 0)),         # w_pool
            ],
            out_specs=(
                pl.BlockSpec((tm, EMBED_DIM), lambda i, k: (i, 0)),        # h (bf16)
                pl.BlockSpec((tm, 1), lambda i, k: (i, 0)),                # score
            ),
            scratch_shapes=[pltpu.VMEM((tm, EMBED_DIM), jnp.float32),
                            pltpu.VMEM((tm, 1), jnp.float32),
                            pltpu.VMEM((tm, 2 * EMBED_DIM), jnp.bfloat16)],
        ),
        compiler_params=pltpu.CompilerParams(
            dimension_semantics=("parallel", "arbitrary"),
            vmem_limit_bytes=_vmem_limit_bytes(tm, tk),
        ),
    )(a_bf16, x_bf16, x_bf16, keepcol_bf16, wcat, b, wp_hat)


def _gap_head_kernel(s_ref, x_ref, w1_ref, b1_ref, w2_ref, b2_ref, w3_ref, b3_ref,
                     o_ref):
    """Fused x1+x2+x3 readout (one bf16 MXU pass) + MLP head + sigmoid."""
    r = jnp.dot(s_ref[...], x_ref[...], preferred_element_type=jnp.float32)
    h = jnp.maximum(
        jnp.dot(r, w1_ref[...], preferred_element_type=jnp.float32) + b1_ref[...], 0.0)
    h = jnp.maximum(
        jnp.dot(h, w2_ref[...], preferred_element_type=jnp.float32) + b2_ref[...], 0.0)
    # F.dropout(p=0.5, training=False) -> identity at inference time.
    logit = jnp.dot(h, w3_ref[...], preferred_element_type=jnp.float32) + b3_ref[...]
    o_ref[...] = 1.0 / (1.0 + jnp.exp(-logit))


def gap_head(s_cat, x_cat, params):
    # tiny single-block call: every operand maps fully into VMEM
    return pl.pallas_call(
        _gap_head_kernel,
        out_shape=jax.ShapeDtypeStruct((B_PAD, 1), jnp.float32),
    )(s_cat, x_cat,
      params["lin1_w"], params["lin1_b"], params["lin2_w"], params["lin2_b"],
      params["lin3_w"], params["lin3_b"])


# ------------------------------ on-device glue ------------------------------

def _topk_keep_mask(score, batch, alive, ratio):
    """PyG TopKPooling selection as a fixed-shape mask (sort-based, no n x n pass).

    keep node i  iff  it is alive and its within-graph descending-score rank
    (ties broken by lower index via stable sort) is < ceil(ratio * n_alive(g)).
    """
    n = score.shape[0]
    idx = jnp.arange(n, dtype=jnp.int32)
    batch_eff = jnp.where(alive, batch, B_PAD).astype(jnp.int32)
    sb, _, order = jax.lax.sort((batch_eff, -score, idx), num_keys=2, is_stable=True)
    start = jnp.searchsorted(sb, jnp.arange(B_PAD + 1, dtype=jnp.int32)).astype(jnp.int32)
    rank_sorted = jnp.arange(n, dtype=jnp.int32) - start[jnp.clip(sb, 0, B_PAD)]
    rank = jnp.zeros((n,), jnp.int32).at[order].set(rank_sorted)
    counts = jnp.zeros((B_PAD + 1,), jnp.int32).at[batch_eff].add(1)
    k_keep = jnp.ceil(ratio * counts[:B_PAD].astype(jnp.float32)).astype(jnp.int32)
    return alive & (rank < k_keep[jnp.clip(batch, 0, B_PAD - 1)])


@jax.jit
def net_forward(params, x_ids, batch, alive, src, dst):
    """Inference forward pass of Net; everything stays on device."""
    n = x_ids.shape[0]
    # one immutable {0,1} adjacency (row = target, col = source), built once in
    # bf16 for the MXU; never rewritten across layers.
    a = jnp.zeros((n, n), jnp.float32).at[dst, src].set(1.0).astype(jnp.bfloat16)

    x = (jnp.take(params["emb"], x_ids, axis=0)
         * alive.astype(jnp.float32)[:, None]).astype(jnp.bfloat16)
    graph_ids = jnp.arange(B_PAD, dtype=jnp.int32)

    sel_list, x_list = [], []
    for layer in (1, 2, 3):
        keepcol = alive.astype(jnp.bfloat16)[None, :]          # (1, n) column mask
        h, score = sage_conv_topk_score(
            a, x, keepcol,
            params[f"conv{layer}_wcat"], params[f"conv{layer}_b"],
            params[f"pool{layer}_w_hat"])
        score = score[:, 0]

        # TopKPooling as masking: removed nodes get x = 0, so they drop out of the
        # next layer's A@X numerator; the masked degree handles the denominator.
        keep = _topk_keep_mask(score, batch, alive, RATIO)
        gate = jnp.where(keep, score, 0.0).astype(jnp.bfloat16)
        x = h * gate[:, None]                                  # bf16 gated features
        alive = keep

        keep_f = keep.astype(jnp.float32)
        sel = (batch[None, :] == graph_ids[:, None]).astype(jnp.float32) * keep_f[None, :]
        cnt = jnp.maximum(jnp.sum(sel, axis=1, keepdims=True), 1.0)
        sel_list.append((sel / cnt).astype(jnp.bfloat16))
        x_list.append(x)

    # fuse the three global-mean-pool readouts into one matmul (concat along K)
    s_cat = jnp.concatenate(sel_list, axis=1)                  # (B_PAD, 3n) bf16
    x_cat = jnp.concatenate(x_list, axis=0)                    # (3n, 128) bf16
    out = gap_head(s_cat, x_cat, params)                       # (B_PAD, 1)
    return out[:, 0]


# --------------------------------- params ---------------------------------

def init_params(key):
    ks = jax.random.split(key, 24)

    def lin_w(k, fan_in, fan_out):
        bound = 1.0 / math.sqrt(fan_in)
        return jax.random.uniform(k, (fan_in, fan_out), jnp.float32, -bound, bound)

    def lin_b(k, fan_in, fan_out):
        bound = 1.0 / math.sqrt(fan_in)
        return jax.random.uniform(k, (1, fan_out), jnp.float32, -bound, bound)

    p = {}
    p["emb"] = jax.random.normal(ks[0], (NUM_EMBEDDINGS, EMBED_DIM), jnp.float32)
    i = 1
    for layer in (1, 2, 3):
        wl = lin_w(ks[i], EMBED_DIM, EMBED_DIM); i += 1   # neighbor (lin_l), as W^T
        wr = lin_w(ks[i], EMBED_DIM, EMBED_DIM); i += 1   # root     (lin_r), as W^T
        p[f"conv{layer}_wcat"] = jnp.concatenate([wl, wr], axis=0).astype(jnp.bfloat16)
        p[f"conv{layer}_b"] = lin_b(ks[i], EMBED_DIM, EMBED_DIM); i += 1
        wp = jax.random.normal(ks[i], (EMBED_DIM, 1), jnp.float32); i += 1
        p[f"pool{layer}_w_hat"] = (wp / jnp.sqrt(jnp.sum(wp * wp))).reshape(1, EMBED_DIM)
    p["lin1_w"] = lin_w(ks[i], 128, 128); i += 1
    p["lin1_b"] = lin_b(ks[i], 128, 128); i += 1
    p["lin2_w"] = lin_w(ks[i], 128, 64); i += 1
    p["lin2_b"] = lin_b(ks[i], 128, 64); i += 1
    p["lin3_w"] = lin_w(ks[i], 64, 1); i += 1
    p["lin3_b"] = lin_b(ks[i], 64, 1); i += 1
    return p


# ----------------------------------- main -----------------------------------

if __name__ == "__main__":
    key = jax.random.PRNGKey(0)
    pkey, xkey = jax.random.split(key)
    params = init_params(pkey)

    # small synthetic session graphs: 4 graphs x 40 nodes, bidirectional ring edges
    # (pads to n=256 -> a 2-row-tile grid, so the "parallel" axis is exercised).
    nodes_per_graph, num_graphs = 40, 4
    n_real = nodes_per_graph * num_graphs
    n_pad = max(NODE_ALIGN, ((n_real + NODE_ALIGN - 1) // NODE_ALIGN) * NODE_ALIGN)

    x_ids_real = jax.random.randint(xkey, (n_real,), 0, NUM_EMBEDDINGS, dtype=jnp.int32)
    x_ids = jnp.zeros((n_pad,), jnp.int32).at[:n_real].set(x_ids_real)
    batch = jnp.full((n_pad,), -1, jnp.int32).at[:n_real].set(
        jnp.repeat(jnp.arange(num_graphs, dtype=jnp.int32), nodes_per_graph))
    alive = jnp.zeros((n_pad,), jnp.bool_).at[:n_real].set(True)

    src_l, dst_l = [], []
    for g in range(num_graphs):
        base = g * nodes_per_graph
        for a in range(nodes_per_graph):
            b = (a + 1) % nodes_per_graph
            src_l += [base + a, base + b]
            dst_l += [base + b, base + a]
    src = jnp.asarray(src_l, jnp.int32)
    dst = jnp.asarray(dst_l, jnp.int32)

    out_pad = net_forward(params, x_ids, batch, alive, src, dst)
    out_pad = jax.block_until_ready(out_pad)
    out = np.asarray(out_pad)[:num_graphs]
    assert out.shape == (num_graphs,)
    assert np.all(np.isfinite(out))
    print("KERNEL_OK")
</pallas_src>

<mosaic_0001>
module attributes {stable_mosaic.version = 11 : i64} {
  func.func private @main(%arg0: i32) attributes {dimension_semantics = [#tpu.dimension_semantics<core_parallel>], iteration_bounds = array<i64: 2>, tpu.core_type = #tpu.core_type<sc_scalar_subcore>, window_params = []} {
    return
  }
}

module attributes {stable_mosaic.version = 11 : i64} {
  func.func private @main(%arg0: i32) attributes {dimension_semantics = [#tpu.dimension_semantics<core_parallel>], iteration_bounds = array<i64: 2>, tpu.core_type = #tpu.core_type<sc_scalar_subcore>, window_params = []} {
    return
  }
}

module attributes {stable_mosaic.version = 11 : i64} {
  func.func @_sage_topk_kernel(%arg0: i32, %arg1: i32, %arg2: memref<128x256xbf16, #tpu.memory_space<vmem>>, %arg3: memref<256x128xbf16, #tpu.memory_space<vmem>>, %arg4: memref<128x128xbf16, #tpu.memory_space<vmem>>, %arg5: memref<1x256xbf16, #tpu.memory_space<vmem>>, %arg6: memref<256x128xbf16, #tpu.memory_space<vmem>>, %arg7: memref<1x128xf32, #tpu.memory_space<vmem>>, %arg8: memref<1x128xf32, #tpu.memory_space<vmem>>, %arg9: memref<128x128xbf16, #tpu.memory_space<vmem>>, %arg10: memref<128x1xf32, #tpu.memory_space<vmem>>, %arg11: memref<128x128xf32, #tpu.memory_space<vmem>>, %arg12: memref<128x1xf32, #tpu.memory_space<vmem>>, %arg13: memref<128x256xbf16, #tpu.memory_space<vmem>>) attributes {dimension_semantics = [#tpu.dimension_semantics<parallel>, #tpu.dimension_semantics<arbitrary>], iteration_bounds = array<i64: 2, 1>, scalar_prefetch = 0 : i64, scratch_operands = 3 : i64, tpu.core_type = #tpu.core_type<tc>, window_params = [{transform_indices = @transform_0, window_bounds = array<i64: 128, 256>}, {transform_indices = @transform_1, window_bounds = array<i64: 256, 128>}, {transform_indices = @transform_2, window_bounds = array<i64: 128, 128>}, {transform_indices = @transform_3, window_bounds = array<i64: 1, 256>}, {pipeline_mode = #tpu.pipeline_mode<synchronous>, transform_indices = @transform_4, window_bounds = array<i64: 256, 128>}, {pipeline_mode = #tpu.pipeline_mode<synchronous>, transform_indices = @transform_5, window_bounds = array<i64: 1, 128>}, {pipeline_mode = #tpu.pipeline_mode<synchronous>, transform_indices = @transform_6, window_bounds = array<i64: 1, 128>}, {transform_indices = @transform_7, window_bounds = array<i64: 128, 128>}, {transform_indices = @transform_8, window_bounds = array<i64: 128, 1>}]} {
    %c0_i32 = arith.constant 0 : i32
    %0 = arith.cmpi eq, %arg1, %c0_i32 : i32
    %1 = arith.extui %0 : i1 to i32
    %c0_i32_0 = arith.constant 0 : i32
    %2 = arith.cmpi ne, %1, %c0_i32_0 : i32
    scf.if %2 {
      %cst_17 = arith.constant 0.000000e+00 : f32
      %21 = vector.broadcast %cst_17 : f32 to vector<128x128xf32>
      %c0_18 = arith.constant 0 : index
      %c0_19 = arith.constant 0 : index
      %22 = vector.load %arg11[%c0_18, %c0_19] : memref<128x128xf32, #tpu.memory_space<vmem>>, vector<128x128xf32>
      tpu.vector_store %arg11[%c0_18, %c0_19], %21 {strides = array<i32>} : memref<128x128xf32, #tpu.memory_space<vmem>>, vector<128x128xf32>,
      %cst_20 = arith.constant 0.000000e+00 : f32
      %23 = vector.broadcast %cst_20 : f32 to vector<128x1xf32>
      %c0_21 = arith.constant 0 : index
      %c0_22 = arith.constant 0 : index
      %24 = vector.load %arg12[%c0_21, %c0_22] : memref<128x1xf32, #tpu.memory_space<vmem>>, vector<128x1xf32>
      tpu.vector_store %arg12[%c0_21, %c0_22], %23 {strides = array<i32>} : memref<128x1xf32, #tpu.memory_space<vmem>>, vector<128x1xf32>,
    } else {
    }
    %c0 = arith.constant 0 : index
    %c0_1 = arith.constant 0 : index
    %3 = vector.load %arg2[%c0, %c0_1] : memref<128x256xbf16, #tpu.memory_space<vmem>>, vector<128x256xbf16>
    %c0_2 = arith.constant 0 : index
    %c0_3 = arith.constant 0 : index
    %4 = vector.load %arg11[%c0_2, %c0_3] : memref<128x128xf32, #tpu.memory_space<vmem>>, vector<128x128xf32>
    %c0_4 = arith.constant 0 : index
    %c0_5 = arith.constant 0 : index
    %5 = vector.load %arg3[%c0_4, %c0_5] : memref<256x128xbf16, #tpu.memory_space<vmem>>, vector<256x128xbf16>
    %cst = arith.constant dense<0.000000e+00> : vector<128x128xf32>
    %6 = tpu.matmul %3, %5, %cst {dimension_numbers = #tpu.dot_dimension_numbers<[1], [0], [0], [1], [0, 0, 1, 1], [], []>} : vector<128x256xbf16>, vector<256x128xbf16>, vector<128x128xf32> -> vector<128x128xf32>
    %7 = arith.addf %4, %6 : vector<128x128xf32>
    %c0_6 = arith.constant 0 : index
    %c0_7 = arith.constant 0 : index
    %8 = vector.load %arg11[%c0_6, %c0_7] : memref<128x128xf32, #tpu.memory_space<vmem>>, vector<128x128xf32>
    tpu.vector_store %arg11[%c0_6, %c0_7], %7 {strides = array<i32>} : memref<128x128xf32, #tpu.memory_space<vmem>>, vector<128x128xf32>,
    %c0_8 = arith.constant 0 : index
    %c0_9 = arith.constant 0 : index
    %9 = vector.load %arg12[%c0_8, %c0_9] : memref<128x1xf32, #tpu.memory_space<vmem>>, vector<128x1xf32>
    %c0_10 = arith.constant 0 : index
    %c0_11 = arith.constant 0 : index
    %10 = vector.load %arg5[%c0_10, %c0_11] : memref<1x256xbf16, #tpu.memory_space<vmem>>, vector<1x256xbf16>
    %11 = vector.broadcast %10 : vector<1x256xbf16> to vector<128x256xbf16>
    %12 = arith.mulf %3, %11 : vector<128x256xbf16>
    %13 = arith.extf %12 : vector<128x256xbf16> to vector<128x256xf32>
    %cst_12 = arith.constant dense<0.000000e+00> : vector<128xf32>
    %14 = vector.multi_reduction <add>, %13, %cst_12 [1] : vector<128x256xf32> to vector<128xf32>
    %15 = vector.shape_cast %14 : vector<128xf32> to vector<128x1xf32>
    %16 = arith.addf %9, %15 : vector<128x1xf32>
    %c0_13 = arith.constant 0 : index
    %c0_14 = arith.constant 0 : index
    %17 = vector.load %arg12[%c0_13, %c0_14] : memref<128x1xf32, #tpu.memory_space<vmem>>, vector<128x1xf32>
    tpu.vector_store %arg12[%c0_13, %c0_14], %16 {strides = array<i32>} : memref<128x1xf32, #tpu.memory_space<vmem>>, vector<128x1xf32>,
    %c0_i32_15 = arith.constant 0 : i32
    %18 = arith.cmpi eq, %arg1, %c0_i32_15 : i32
    %19 = arith.extui %18 : i1 to i32
    %c0_i32_16 = arith.constant 0 : i32
    %20 = arith.cmpi ne, %19, %c0_i32_16 : i32
    scf.if %20 {
      %c0_17 = arith.constant 0 : index
      %c0_18 = arith.constant 0 : index
      %21 = vector.load %arg12[%c0_17, %c0_18] : memref<128x1xf32, #tpu.memory_space<vmem>>, vector<128x1xf32>
      %cst_19 = arith.constant 1.000000e+00 : f32
      %22 = vector.broadcast %cst_19 : f32 to vector<128x1xf32>
      %23 = arith.maximumf %21, %22 : vector<128x1xf32>
      %24 = tpu.reciprocal %23 {approx = true} : vector<128x1xf32> -> vector<128x1xf32>
      %c0_20 = arith.constant 0 : index
      %c0_21 = arith.constant 0 : index
      %25 = vector.load %arg11[%c0_20, %c0_21] : memref<128x128xf32, #tpu.memory_space<vmem>>, vector<128x128xf32>
      %26 = vector.broadcast %24 : vector<128x1xf32> to vector<128x128xf32>
      %27 = arith.mulf %25, %26 : vector<128x128xf32>
      %28 = arith.truncf %27 : vector<128x128xf32> to vector<128x128xbf16>
      %c0_22 = arith.constant 0 : index
      %c0_23 = arith.constant 0 : index
      %29 = vector.load %arg13[%c0_22, %c0_23] : memref<128x256xbf16, #tpu.memory_space<vmem>>, vector<128x128xbf16>
      tpu.vector_store %arg13[%c0_22, %c0_23], %28 {strides = array<i32>} : memref<128x256xbf16, #tpu.memory_space<vmem>>, vector<128x128xbf16>,
      %c0_24 = arith.constant 0 : index
      %c0_25 = arith.constant 0 : index
      %30 = vector.load %arg4[%c0_24, %c0_25] : memref<128x128xbf16, #tpu.memory_space<vmem>>, vector<128x128xbf16>
      %c0_26 = arith.constant 0 : index
      %c128 = arith.constant 128 : index
      %31 = vector.load %arg13[%c0_26, %c128] : memref<128x256xbf16, #tpu.memory_space<vmem>>, vector<128x128xbf16>
      tpu.vector_store %arg13[%c0_26, %c128], %30 {strides = array<i32>} : memref<128x256xbf16, #tpu.memory_space<vmem>>, vector<128x128xbf16>,
      %c0_27 = arith.constant 0 : index
      %c0_28 = arith.constant 0 : index
      %32 = vector.load %arg13[%c0_27, %c0_28] : memref<128x256xbf16, #tpu.memory_space<vmem>>, vector<128x256xbf16>
      %c0_29 = arith.constant 0 : index
      %c0_30 = arith.constant 0 : index
      %33 = vector.load %arg6[%c0_29, %c0_30] : memref<256x128xbf16, #tpu.memory_space<vmem>>, vector<256x128xbf16>
      %cst_31 = arith.constant dense<0.000000e+00> : vector<128x128xf32>
      %34 = tpu.matmul %32, %33, %cst_31 {dimension_numbers = #tpu.dot_dimension_numbers<[1], [0], [0], [1], [0, 0, 1, 1], [], []>} : vector<128x256xbf16>, vector<256x128xbf16>, vector<128x128xf32> -> vector<128x128xf32>
      %c0_32 = arith.constant 0 : index
      %c0_33 = arith.constant 0 : index
      %35 = vector.load %arg7[%c0_32, %c0_33] : memref<1x128xf32, #tpu.memory_space<vmem>>, vector<1x128xf32>
      %36 = vector.broadcast %35 : vector<1x128xf32> to vector<128x128xf32>
      %37 = arith.addf %34, %36 : vector<128x128xf32>
      %cst_34 = arith.constant 0.000000e+00 : f32
      %38 = vector.broadcast %cst_34 : f32 to vector<128x128xf32>
      %39 = arith.maximumf %37, %38 : vector<128x128xf32>
      %40 = arith.truncf %39 : vector<128x128xf32> to vector<128x128xbf16>
      %c0_35 = arith.constant 0 : index
      %c0_36 = arith.constant 0 : index
      %41 = vector.load %arg9[%c0_35, %c0_36] : memref<128x128xbf16, #tpu.memory_space<vmem>>, vector<128x128xbf16>
      tpu.vector_store %arg9[%c0_35, %c0_36], %40 {strides = array<i32>} : memref<128x128xbf16, #tpu.memory_space<vmem>>, vector<128x128xbf16>,
      %c0_37 = arith.constant 0 : index
      %c0_38 = arith.constant 0 : index
      %42 = vector.load %arg8[%c0_37, %c0_38] : memref<1x128xf32, #tpu.memory_space<vmem>>, vector<1x128xf32>
      %43 = vector.broadcast %42 : vector<1x128xf32> to vector<128x128xf32>
      %44 = arith.mulf %39, %43 : vector<128x128xf32>
      %cst_39 = arith.constant dense<0.000000e+00> : vector<128xf32>
      %45 = vector.multi_reduction <add>, %44, %cst_39 [1] : vector<128x128xf32> to vector<128xf32>
      %46 = vector.shape_cast %45 : vector<128xf32> to vector<128x1xf32>
      %47 = math.tanh %46 : vector<128x1xf32>
      %c0_40 = arith.constant 0 : index
      %c0_41 = arith.constant 0 : index
      %48 = vector.load %arg10[%c0_40, %c0_41] : memref<128x1xf32, #tpu.memory_space<vmem>>, vector<128x1xf32>
      tpu.vector_store %arg10[%c0_40, %c0_41], %47 {strides = array<i32>} : memref<128x1xf32, #tpu.memory_space<vmem>>, vector<128x1xf32>,
    } else {
    }
    return
  }
  func.func @transform_0(%arg0: i32, %arg1: i32) -> (i32, i32) {
    %c0_i32 = arith.constant 0 : i32
    return %arg0, %arg1 : i32, i32
  }
  func.func @transform_1(%arg0: i32, %arg1: i32) -> (i32, i32) {
    %c0_i32 = arith.constant 0 : i32
    %c0_i32_0 = arith.constant 0 : i32
    return %arg1, %c0_i32 : i32, i32
  }
  func.func @transform_2(%arg0: i32, %arg1: i32) -> (i32, i32) {
    %c0_i32 = arith.constant 0 : i32
    %c0_i32_0 = arith.constant 0 : i32
    return %arg0, %c0_i32 : i32, i32
  }
  func.func @transform_3(%arg0: i32, %arg1: i32) -> (i32, i32) {
    %c0_i32 = arith.constant 0 : i32
    %c0_i32_0 = arith.constant 0 : i32
    return %c0_i32, %arg1 : i32, i32
  }
  func.func @transform_4(%arg0: i32, %arg1: i32) -> (i32, i32) {
    %c0_i32 = arith.constant 0 : i32
    %c0_i32_0 = arith.constant 0 : i32
    %c0_i32_1 = arith.constant 0 : i32
    return %c0_i32, %c0_i32_0 : i32, i32
  }
  func.func @transform_5(%arg0: i32, %arg1: i32) -> (i32, i32) {
    %c0_i32 = arith.constant 0 : i32
    %c0_i32_0 = arith.constant 0 : i32
    %c0_i32_1 = arith.constant 0 : i32
    return %c0_i32, %c0_i32_0 : i32, i32
  }
  func.func @transform_6(%arg0: i32, %arg1: i32) -> (i32, i32) {
    %c0_i32 = arith.constant 0 : i32
    %c0_i32_0 = arith.constant 0 : i32
    %c0_i32_1 = arith.constant 0 : i32
    return %c0_i32, %c0_i32_0 : i32, i32
  }
  func.func @transform_7(%arg0: i32, %arg1: i32) -> (i32, i32) {
    %c0_i32 = arith.constant 0 : i32
    %c0_i32_0 = arith.constant 0 : i32
    return %arg0, %c0_i32 : i32, i32
  }
  func.func @transform_8(%arg0: i32, %arg1: i32) -> (i32, i32) {
    %c0_i32 = arith.constant 0 : i32
    %c0_i32_0 = arith.constant 0 : i32
    return %arg0, %c0_i32 : i32, i32
  }
}

module attributes {stable_mosaic.version = 11 : i64} {
  func.func @_gap_head_kernel(%arg0: memref<8x768xbf16, #tpu.memory_space<vmem>>, %arg1: memref<768x128xbf16, #tpu.memory_space<vmem>>, %arg2: memref<128x128xf32, #tpu.memory_space<vmem>>, %arg3: memref<1x128xf32, #tpu.memory_space<vmem>>, %arg4: memref<128x64xf32, #tpu.memory_space<vmem>>, %arg5: memref<1x64xf32, #tpu.memory_space<vmem>>, %arg6: memref<64x1xf32, #tpu.memory_space<vmem>>, %arg7: memref<1x1xf32, #tpu.memory_space<vmem>>, %arg8: memref<8x1xf32, #tpu.memory_space<vmem>>) attributes {dimension_semantics = [], scalar_prefetch = 0 : i64, scratch_operands = 0 : i64, tpu.core_type = #tpu.core_type<tc>} {
    %c0 = arith.constant 0 : index
    %c0_0 = arith.constant 0 : index
    %0 = vector.load %arg0[%c0, %c0_0] : memref<8x768xbf16, #tpu.memory_space<vmem>>, vector<8x768xbf16>
    %c0_1 = arith.constant 0 : index
    %c0_2 = arith.constant 0 : index
    %1 = vector.load %arg1[%c0_1, %c0_2] : memref<768x128xbf16, #tpu.memory_space<vmem>>, vector<768x128xbf16>
    %cst = arith.constant dense<0.000000e+00> : vector<8x128xf32>
    %2 = tpu.matmul %0, %1, %cst {dimension_numbers = #tpu.dot_dimension_numbers<[1], [0], [0], [1], [0, 0, 1, 1], [], []>} : vector<8x768xbf16>, vector<768x128xbf16>, vector<8x128xf32> -> vector<8x128xf32>
    %c0_3 = arith.constant 0 : index
    %c0_4 = arith.constant 0 : index
    %3 = vector.load %arg2[%c0_3, %c0_4] : memref<128x128xf32, #tpu.memory_space<vmem>>, vector<128x128xf32>
    %cst_5 = arith.constant dense<0.000000e+00> : vector<8x128xf32>
    %4 = tpu.matmul %2, %3, %cst_5 {dimension_numbers = #tpu.dot_dimension_numbers<[1], [0], [0], [1], [0, 0, 1, 1], [], []>} : vector<8x128xf32>, vector<128x128xf32>, vector<8x128xf32> -> vector<8x128xf32>
    %c0_6 = arith.constant 0 : index
    %c0_7 = arith.constant 0 : index
    %5 = vector.load %arg3[%c0_6, %c0_7] : memref<1x128xf32, #tpu.memory_space<vmem>>, vector<1x128xf32>
    %6 = vector.broadcast %5 : vector<1x128xf32> to vector<8x128xf32>
    %7 = arith.addf %4, %6 : vector<8x128xf32>
    %cst_8 = arith.constant 0.000000e+00 : f32
    %8 = vector.broadcast %cst_8 : f32 to vector<8x128xf32>
    %9 = arith.maximumf %7, %8 : vector<8x128xf32>
    %c0_9 = arith.constant 0 : index
    %c0_10 = arith.constant 0 : index
    %10 = vector.load %arg4[%c0_9, %c0_10] : memref<128x64xf32, #tpu.memory_space<vmem>>, vector<128x64xf32>
    %cst_11 = arith.constant dense<0.000000e+00> : vector<8x64xf32>
    %11 = tpu.matmul %9, %10, %cst_11 {dimension_numbers = #tpu.dot_dimension_numbers<[1], [0], [0], [1], [0, 0, 1, 1], [], []>} : vector<8x128xf32>, vector<128x64xf32>, vector<8x64xf32> -> vector<8x64xf32>
    %c0_12 = arith.constant 0 : index
    %c0_13 = arith.constant 0 : index
    %12 = vector.load %arg5[%c0_12, %c0_13] : memref<1x64xf32, #tpu.memory_space<vmem>>, vector<1x64xf32>
    %13 = vector.broadcast %12 : vector<1x64xf32> to vector<8x64xf32>
    %14 = arith.addf %11, %13 : vector<8x64xf32>
    %cst_14 = arith.constant 0.000000e+00 : f32
    %15 = vector.broadcast %cst_14 : f32 to vector<8x64xf32>
    %16 = arith.maximumf %14, %15 : vector<8x64xf32>
    %c0_15 = arith.constant 0 : index
    %c0_16 = arith.constant 0 : index
    %17 = vector.load %arg6[%c0_15, %c0_16] : memref<64x1xf32, #tpu.memory_space<vmem>>, vector<64x1xf32>
    %cst_17 = arith.constant dense<0.000000e+00> : vector<8x1xf32>
    %18 = tpu.matmul %16, %17, %cst_17 {dimension_numbers = #tpu.dot_dimension_numbers<[1], [0], [0], [1], [0, 0, 1, 1], [], []>} : vector<8x64xf32>, vector<64x1xf32>, vector<8x1xf32> -> vector<8x1xf32>
    %c0_18 = arith.constant 0 : index
    %c0_19 = arith.constant 0 : index
    %19 = vector.load %arg7[%c0_18, %c0_19] : memref<1x1xf32, #tpu.memory_space<vmem>>, vector<1x1xf32>
    %20 = vector.broadcast %19 : vector<1x1xf32> to vector<8x1xf32>
    %21 = arith.addf %18, %20 : vector<8x1xf32>
    %cst_20 = arith.constant 0.000000e+00 : f32
    %22 = vector.broadcast %cst_20 : f32 to vector<8x1xf32>
    %23 = arith.subf %22, %21 : vector<8x1xf32>
    %24 = math.exp %23 : vector<8x1xf32>
    %cst_21 = arith.constant 1.000000e+00 : f32
    %25 = vector.broadcast %cst_21 : f32 to vector<8x1xf32>
    %26 = arith.addf %25, %24 : vector<8x1xf32>
    %cst_22 = arith.constant 1.000000e+00 : f32
    %27 = vector.broadcast %cst_22 : f32 to vector<8x1xf32>
    %28 = arith.divf %27, %26 : vector<8x1xf32>
    %c0_23 = arith.constant 0 : index
    %c0_24 = arith.constant 0 : index
    %29 = vector.load %arg8[%c0_23, %c0_24] : memref<8x1xf32, #tpu.memory_space<vmem>>, vector<8x1xf32>
    tpu.vector_store %arg8[%c0_23, %c0_24], %28 {strides = array<i32>} : memref<8x1xf32, #tpu.memory_space<vmem>>, vector<8x1xf32>,
    return
  }
}

</mosaic_0001>

<bundles_post_ra>
// kernel: custom-call.2
= control target key start
LH: loop header
LB: loop body
LE: loop exit
PB: predicated region body
PF: predicated region fallthrough
CT: control target
= control target key end

     0   :  { %s6_s0 = inlined_call_operand.vmem [shape: u32[9], index: 0, kind: output, shape index: {}]  }

// kernel: neg.3
= control target key start
LH: loop header
LB: loop body
LE: loop exit
PB: predicated region body
PF: predicated region fallthrough
CT: control target
= control target key end

     0   :  { %s24_s0 = inlined_call_operand.vmem [shape: f32[256], index: 0, kind: input, shape index: {}]   ;;  %s25_s1 = inlined_call_operand.vmem [shape: f32[256], index: 1, kind: output, shape index: {}]  }
   0x1   :  { %v2_v0 = vld [vmem:[%s24_s0] sm:$0x3] }
   0x2   :  { %v5_v1 = vxor.u32 2147483648, %v2_v0 }
   0x4   :  { %7 = vst [vmem:[%s25_s1] sm:$0x3] %v5_v1 }

// kernel: net_forward.4
= control target key start
LH: loop header
LB: loop body
LE: loop exit
PB: predicated region body
PF: predicated region fallthrough
CT: control target
= control target key end

     0   :  { %s2506_s27 = smov 0   ;;  %s2508_s28 = smov 0   ;;  %s2928_s0 = inlined_call_operand.vmem [shape: bf16[256,256], index: 0, kind: input, shape index: {}]   ;;  %s2929_s1 = inlined_call_operand.vmem [shape: bf16[256,128], index: 1, kind: input, shape index: {}, may-alias: {1,2}]   ;;  %s2930_s2 = inlined_call_operand.vmem [shape: bf16[256,128], index: 2, kind: input, shape index: {}, may-alias: {1,2}]   ;;  %s2931_s3 = inlined_call_operand.vmem [shape: bf16[1,256], index: 3, kind: input, shape index: {}]   ;;  %s2932_s4 = inlined_call_operand.vmem [shape: bf16[256,128], index: 4, kind: input, shape index: {}]   ;;  %s2933_s5 = inlined_call_operand.vmem [shape: f32[1,128], index: 5, kind: input, shape index: {}]   ;;  %s2934_s6 = inlined_call_operand.vmem [shape: f32[1,128], index: 6, kind: input, shape index: {}]   ;;  %s2935_s7 = inlined_call_operand.vmem [shape: bf16[256,128], index: 7, kind: output, shape index: {0}]   ;;  %s2936_s8 = inlined_call_operand.vmem [shape: f32[256,1], index: 8, kind: output, shape index: {1}]  }
   0x1   :  { %s2510_s29 = smov 0  }
   0x2 LB: > { %s31_s30 = sadd.s32 1, %s2452_s28  ;;  %p1949_p0 = scmp.ge.s32.totalorder %s2456_s29, 1  ;;  %s2456_s29 = sphi %s2510_s29, %s19_s29   ;;  %s2452_s28 = sphi %s2508_s28, %s2938_s28   ;;  %s2448_s27 = sphi %s2506_s27, %s2937_s27  }
   0x3   : > { %p33_p1 = scmp.ge.s32.totalorder %s31_s30, 2  ;;  %p318_p2 = scmp.lt.s32.totalorder %s2456_s29, 3 }
   0x5   : > { %s2940_s30 = smov (%p33_p1, %s31_s30), 0  ;;  %p319_p3 = pnand %p1949_p0, %p318_p2 }
   0x6   : > { %s1950_s9 = sshll.u32 (!%p319_p3), %s2448_s27, 4 }
   0x7   : > { %322 = sbr.rel (%p319_p3) target bundleno = 754 (0x2f2), region = 48  ;;  %p378_p4 = scmp.lt.s32.totalorder (!%p319_p3), %s1950_s9, 31 }
   0xc   : > { %v1991_v0 = vld.sshfl [vmem:[%s2931_s3] sm:$0x11 pattern:$0x75316420]  ;;  %v853_v1 = vlaneseq  ;;  %v2298_v2 = vld [vmem:[%s2929_s1 + $0x78] sm:$0xff]   ;;  %v2300_v7 = vld [vmem:[%s2929_s1 + $0x70] sm:$0xff]  }
   0xd   : > { %v2299_v3 = vld [vmem:[%s2929_s1 + $0x38] sm:$0xff]   ;;  %v2458_v4 = vmov 1966171168   ;;  %2141 = vmatprep.subr.bf16.mxu0 %v2298_v2  ;;  %s2942_s9 = smov (!%p378_p4, %s1950_s9), 31  ;;  %v2301_v8 = vld [vmem:[%s2929_s1 + $0x30] sm:$0xff]   ;;  %v849_v9 = vcombine.high %v1991_v0, %v1991_v0  ;;  %v2302_v11 = vld [vmem:[%s2929_s1 + $0x68] sm:$0xff]  }
   0xe   : > { %v851_v5 = vunpack.c.l.s4 %v2458_v4  ;;  %v854_v6 = vshrl.u32 %v853_v1, 7  ;;  %2142 = vmatpush3.bf16.msra.mxu0 %v2299_v3  ;;  %s2061_s22 = sshll.u32 %s2942_s9, 3  ;;  %vm438_vm0 = vcmask 7168   ;;  %v2459_v18 = vmov 0.0   ;;  %v2303_v24 = vld [vmem:[%s2929_s1 + $0x28] sm:$0xff]   ;;  %v2304_v28 = vld [vmem:[%s2929_s1 + $0x60] sm:$0xff]  }
   0xf   : > { %2143 = vmatprep.subr.bf16.mxu0 %v2300_v7  ;;  %s2550_s25 = scalar_lea.vmem %s2928_s0, %s2061_s22  ;;  %441 = vst.msk [vmem:[#allocation3 + $0x10] sm:$0xff] %vm438_vm0, %v2459_v18  ;;  %439 = vst.msk [vmem:[#allocation3] sm:$0xff] %vm438_vm0, %v2459_v18  ;;  %v2305_v29 = vld [vmem:[%s2929_s1 + $0x20] sm:$0xff]   ;;  %v2306_v32 = vld [vmem:[%s2929_s1 + $0x58] sm:$0xff]   ;;  %s1954_s11 = sshll.u32 %s2942_s9, 2 }
  0x10   : > { %v852_v10 = vunpack.c.0.s8 %v851_v5  ;;  %v869_v15 = vsub.s32 0, %v854_v6  ;;  %v2553_v16 = vld [vmem:[%s2550_s25] sm:$0xff]  ;;  %v2556_v17 = vld [vmem:[%s2550_s25 + $0x8] sm:$0xff]  ;;  %440 = vst.msk [vmem:[#allocation3 + $0x8] sm:$0xff] %vm438_vm0, %v2459_v18  ;;  %442 = vst.msk [vmem:[#allocation3 + $0x18] sm:$0xff] %vm438_vm0, %v2459_v18  ;;  %s2745_s15 = scalar_lea.vmem %s2930_s2, %s1954_s11  ;;  %s2841_s23 = scalar_lea.vmem %s2935_s7, %s1954_s11 }
  0x11   : > { %443 = vst.msk [vmem:[#allocation3 + $0x20] sm:$0xff] %vm438_vm0, %v2459_v18  ;;  %444 = vst.msk [vmem:[#allocation3 + $0x28] sm:$0xff] %vm438_vm0, %v2459_v18  ;;  %v1960_v19 = vcombine.high %v2553_v16, %v2556_v17  ;;  %v2577_v22 = vld [vmem:[%s2550_s25 + $0x10] sm:$0xff]  ;;  %v2580_v23 = vld [vmem:[%s2550_s25 + $0x18] sm:$0xff]  ;;  %s2885_s26 = scalar_lea.vmem %s2936_s8, %s2061_s22 }
  0x12   : > { %v855_v12 = vsub.s32 %v852_v10, %v854_v6  ;;  %2144 = vmatpush3.bf16.msra.mxu0 %v2301_v8  ;;  %445 = vst.msk [vmem:[#allocation3 + $0x30] sm:$0xff] %vm438_vm0, %v2459_v18  ;;  %446 = vst.msk [vmem:[#allocation3 + $0x38] sm:$0xff] %vm438_vm0, %v2459_v18  ;;  %v2586_v27 = vld [vmem:[%s2550_s25 + $0x28] sm:$0xff]  ;;  %v2597_v31 = vld [vmem:[%s2550_s25 + $0x20] sm:$0xff] }
  0x13   : > { %2145 = vmatprep.subr.bf16.mxu0 %v2302_v11  ;;  %447 = vst.msk [vmem:[#allocation3 + $0x40] sm:$0xff] %vm438_vm0, %v2459_v18  ;;  %448 = vst.msk [vmem:[#allocation3 + $0x48] sm:$0xff] %vm438_vm0, %v2459_v18  ;;  %727 = vmatprep.mubr.bf16.mxu0 %v1960_v19  ;;  %v2307_v39 = vld [vmem:[%s2929_s1 + $0x18] sm:$0xff]   ;;  %v2308_v49 = vld [vmem:[%s2929_s1 + $0x50] sm:$0xff]  }
  0x14   : > { %v856_v13 = vrot.slane %v1991_v0, %v855_v12  ;;  %v863_v14 = vrot.slane %v849_v9, %v855_v12  ;;  %449 = vst.msk [vmem:[#allocation3 + $0x50] sm:$0xff] %vm438_vm0, %v2459_v18  ;;  %450 = vst.msk [vmem:[#allocation3 + $0x58] sm:$0xff] %vm438_vm0, %v2459_v18  ;;  %v2618_v44 = vld [vmem:[%s2550_s25 + $0x38] sm:$0xff]  ;;  %v2624_v52 = vld [vmem:[%s2550_s25 + $0x48] sm:$0xff] }
  0x15   : > { %451 = vst.msk [vmem:[#allocation3 + $0x60] sm:$0xff] %vm438_vm0, %v2459_v18  ;;  %452 = vst.msk [vmem:[#allocation3 + $0x68] sm:$0xff] %vm438_vm0, %v2459_v18  ;;  %v2627_v53 = vld [vmem:[%s2550_s25 + $0x30] sm:$0xff]  ;;  %v2635_v61 = vld [vmem:[%s2550_s25 + $0x40] sm:$0xff] }
  0x16   : > { %453 = vst.msk [vmem:[#allocation3 + $0x70] sm:$0xff] %vm438_vm0, %v2459_v18  ;;  %454 = vst.msk [vmem:[#allocation3 + $0x78] sm:$0xff] %vm438_vm0, %v2459_v18  ;;  %v865_v20 = vpack.i.b16 %v856_v13, %v856_v13  ;;  %v872_v21 = vpack.i.b16 %v863_v14, %v863_v14  ;;  %2146 = vmatpush3.bf16.msra.mxu0 %v2303_v24  ;;  %v2309_v57 = vld [vmem:[%s2929_s1 + $0x10] sm:$0xff]   ;;  %v2310_v62 = vld [vmem:[%s2929_s1 + $0x48] sm:$0xff]  }
  0x17   : > { %2147 = vmatprep.subr.bf16.mxu0 %v2304_v28  ;;  %v2311_v0 = vld [vmem:[%s2929_s1 + $0x8] sm:$0xff]   ;;  %v2644_v1 = vld [vmem:[%s2550_s25 + $0x58] sm:$0xff]  ;;  %v2651_v7 = vld [vmem:[%s2550_s25 + $0x50] sm:$0xff] }
  0x18   : > { %v870_v25 = vrot.slane %v865_v20, %v869_v15  ;;  %v877_v26 = vrot.slane %v872_v21, %v869_v15  ;;  %v2312_v8 = vld [vmem:[%s2929_s1 + $0x40] sm:$0xff]   ;;  %v2662_v14 = vld [vmem:[%s2550_s25 + $0x68] sm:$0xff] }
  0x19   : > { %v2313_v13 = vld [vmem:[%s2929_s1] sm:$0xff]  }
  0x1a   : > { %v2594_v30 = vcombine.low %v870_v25, %v877_v26  ;;  %2148 = vmatpush3.bf16.msra.mxu0 %v2305_v29  ;;  %v2669_v28 = vld [vmem:[%s2550_s25 + $0x60] sm:$0xff]  ;;  %v1959_v29 = vcombine.low %v2553_v16, %v2556_v17 }
  0x1b   : > { %2149 = vmatprep.subr.bf16.mxu0 %v2306_v32  ;;  %v1962_v32 = vcombine.high %v2577_v22, %v2580_v23 }
  0x1c   : > { %v886_v33 = vmul.bf16 %v2594_v30, %v2577_v22  ;;  %v884_v34 = vmul.bf16 %v2594_v30, %v2553_v16  ;;  %v887_v35 = vmul.bf16 %v2594_v30, %v2580_v23  ;;  %v885_v36 = vmul.bf16 %v2594_v30, %v2556_v17  ;;  %v469_v16 = vld [vmem:[%s2550_s25 + $0x70] sm:$0xff] }
  0x1d   : > { %v889_v37 = vmul.bf16 %v2594_v30, %v2586_v27  ;;  %v888_v38 = vmul.bf16 %v2594_v30, %v2597_v31  ;;  %v891_v56 = vmul.bf16 %v2594_v30, %v2618_v44  ;;  %v890_v2 = vmul.bf16 %v2594_v30, %v2627_v53 }
  0x1e   : > { %v904_v40 = vunpack.c.l.bf16 %v886_v33  ;;  %v905_v41 = vunpack.c.h.bf16 %v886_v33  ;;  %v900_v42 = vunpack.c.l.bf16 %v884_v34  ;;  %v901_v43 = vunpack.c.h.bf16 %v884_v34  ;;  %2150 = vmatpush3.bf16.msra.mxu0 %v2307_v39 }
  0x1f   : > { %v906_v45 = vunpack.c.l.bf16 %v887_v35  ;;  %v907_v46 = vunpack.c.h.bf16 %v887_v35  ;;  %v902_v47 = vunpack.c.l.bf16 %v885_v36  ;;  %v903_v48 = vunpack.c.h.bf16 %v885_v36  ;;  %2151 = vmatprep.subr.bf16.mxu0 %v2308_v49 }
  0x20   : > { %v938_v50 = vadd.f32 %v905_v41, %v904_v40  ;;  %v932_v51 = vadd.f32 %v901_v43, %v900_v42  ;;  %v910_v54 = vunpack.c.l.bf16 %v889_v37  ;;  %v911_v55 = vunpack.c.h.bf16 %v889_v37  ;;  %v470_v37 = vld [vmem:[%s2550_s25 + $0x78] sm:$0xff] }
  0x21   : > { %v941_v58 = vadd.f32 %v907_v46, %v906_v45  ;;  %v935_v59 = vadd.f32 %v903_v48, %v902_v47  ;;  %v908_v60 = vunpack.c.l.bf16 %v888_v38  ;;  %v909_v63 = vunpack.c.h.bf16 %v888_v38 }
  0x22   : > { %939 = vadd.xlane.f32.xlu1 %v938_v50  ;;  %933 = vadd.xlane.f32.xlu0 %v932_v51  ;;  %v947_v3 = vadd.f32 %v911_v55, %v910_v54  ;;  %v914_v4 = vunpack.c.l.bf16 %v891_v56  ;;  %v915_v5 = vunpack.c.h.bf16 %v891_v56  ;;  %v893_v6 = vmul.bf16 %v2594_v30, %v2624_v52 }
  0x23   : > { %2152 = vmatpush3.bf16.msra.mxu0 %v2309_v57  ;;  %v944_v9 = vadd.f32 %v909_v63, %v908_v60  ;;  %v912_v10 = vunpack.c.l.bf16 %v890_v2  ;;  %v913_v11 = vunpack.c.h.bf16 %v890_v2  ;;  %v892_v12 = vmul.bf16 %v2594_v30, %v2635_v61 }
  0x24   : > { %2153 = vmatprep.subr.bf16.mxu0 %v2310_v62  ;;  %v953_v15 = vadd.f32 %v915_v5, %v914_v4  ;;  %v918_v18 = vunpack.c.l.bf16 %v893_v6  ;;  %v919_v19 = vunpack.c.h.bf16 %v893_v6  ;;  %v895_v20 = vmul.bf16 %v2594_v30, %v2644_v1  ;;  %v2332_v4 = vld [vmem:[%s2932_s4 + $0x70] sm:$0xff]   ;;  %v2334_v6 = vld [vmem:[%s2932_s4 + $0x68] sm:$0xff]  }
  0x25   : > { %v950_v21 = vadd.f32 %v913_v11, %v912_v10  ;;  %v916_v24 = vunpack.c.l.bf16 %v892_v12  ;;  %v917_v25 = vunpack.c.h.bf16 %v892_v12  ;;  %v894_v26 = vmul.bf16 %v2594_v30, %v2651_v7  ;;  %v2333_v5 = vld [vmem:[%s2932_s4 + $0x30] sm:$0xff]   ;;  %v824_v10 = vld [vmem:[#allocation3] sm:$0xff] }
  0x26   : > { %942 = vadd.xlane.f32.xlu1 %v941_v58  ;;  %936 = vadd.xlane.f32.xlu0 %v935_v59  ;;  %v959_v33 = vadd.f32 %v919_v19, %v918_v18  ;;  %v922_v34 = vunpack.c.l.bf16 %v895_v20  ;;  %v923_v35 = vunpack.c.h.bf16 %v895_v20  ;;  %v897_v36 = vmul.bf16 %v2594_v30, %v2662_v14  ;;  %v825_v18 = vld [vmem:[#allocation3 + $0x8] sm:$0xff] }
  0x27   : > { %2154 = vmatpush3.bf16.msra.mxu0 %v2311_v0  ;;  %v956_v38 = vadd.f32 %v917_v25, %v916_v24  ;;  %v920_v39 = vunpack.c.l.bf16 %v894_v26  ;;  %v921_v40 = vunpack.c.h.bf16 %v894_v26  ;;  %v896_v41 = vmul.bf16 %v2594_v30, %v2669_v28  ;;  %v829_v25 = vld [vmem:[#allocation3 + $0x28] sm:$0xff]  ;;  %v828_v26 = vld [vmem:[#allocation3 + $0x20] sm:$0xff] }
  0x28   : > { %2155 = vmatprep.subr.bf16.mxu0 %v2312_v8  ;;  %v965_v17 = vadd.f32 %v923_v35, %v922_v34  ;;  %v926_v42 = vunpack.c.l.bf16 %v897_v36  ;;  %v927_v43 = vunpack.c.h.bf16 %v897_v36  ;;  %v899_v45 = vmul.bf16 %v2594_v30, %v470_v37  ;;  %v2336_v8 = vld [vmem:[%s2932_s4 + $0x60] sm:$0xff]   ;;  %v831_v34 = vld [vmem:[#allocation3 + $0x38] sm:$0xff]  ;;  %v830_v35 = vld [vmem:[#allocation3 + $0x30] sm:$0xff] }
  0x29   : > { %v962_v46 = vadd.f32 %v921_v40, %v920_v39  ;;  %v924_v47 = vunpack.c.l.bf16 %v896_v41  ;;  %v925_v48 = vunpack.c.h.bf16 %v896_v41  ;;  %v898_v49 = vmul.bf16 %v2594_v30, %v469_v16 }
  0x2a   : > { %948 = vadd.xlane.f32.xlu1 %v947_v3  ;;  %945 = vadd.xlane.f32.xlu0 %v944_v9  ;;  %v1961_v50 = vcombine.low %v2577_v22, %v2580_v23  ;;  %v930_v51 = vunpack.c.l.bf16 %v899_v45  ;;  %v931_v54 = vunpack.c.h.bf16 %v899_v45  ;;  %v1964_v55 = vcombine.high %v2597_v31, %v2586_v27  ;;  %v826_v9 = vld [vmem:[#allocation3 + $0x10] sm:$0xff] }
  0x2b   : > { %2156 = vmatpush3.bf16.msra.mxu0 %v2313_v13  ;;  %v971_v56 = vadd.f32 %v927_v43, %v926_v42  ;;  %v968_v57 = vadd.f32 %v925_v48, %v924_v47  ;;  %v928_v58 = vunpack.c.l.bf16 %v898_v49  ;;  %v929_v59 = vunpack.c.h.bf16 %v898_v49  ;;  %v832_v43 = vld [vmem:[#allocation3 + $0x40] sm:$0xff] }
  0x2c   : > { %v977_v60 = vadd.f32 %v931_v54, %v930_v51  ;;  %v1963_v22 = vcombine.low %v2597_v31, %v2586_v27  ;;  %v1966_v23 = vcombine.high %v2627_v53, %v2618_v44  ;;  %v1965_v62 = vcombine.low %v2627_v53, %v2618_v44  ;;  %v835_v54 = vld [vmem:[#allocation3 + $0x58] sm:$0xff] }
  0x2d   : > { %v974_v30 = vadd.f32 %v929_v59, %v928_v58  ;;  %v1968_v63 = vcombine.high %v2635_v61, %v2624_v52  ;;  %v2460_v0 = vmov 0   ;;  %v1967_v27 = vcombine.low %v2635_v61, %v2624_v52  ;;  %v2330_v61 = vld [vmem:[%s2932_s4 + $0x78] sm:$0xff]  }
  0x2e   : > { %954 = vadd.xlane.f32.xlu1 %v953_v15  ;;  %951 = vadd.xlane.f32.xlu0 %v950_v21  ;;  %v1970_v31 = vcombine.high %v2651_v7, %v2644_v1  ;;  %v1969_v2 = vcombine.low %v2651_v7, %v2644_v1  ;;  %v1972_v44 = vcombine.high %v2669_v28, %v2662_v14  ;;  %v2331_v1 = vld [vmem:[%s2932_s4 + $0x38] sm:$0xff]   ;;  %v2335_v7 = vld [vmem:[%s2932_s4 + $0x28] sm:$0xff]   ;;  %v827_v15 = vld [vmem:[#allocation3 + $0x18] sm:$0xff] }
  0x2f   : > { %728 = vmatmul.mubr.bf16.vlgmr.msra.gmra.mxu0 %v1959_v29  ;;  %2296 = vset.pattern.permute.xlu0 %v2460_v0  ;;  %v1971_v53 = vcombine.low %v2669_v28, %v2662_v14  ;;  %v1974_v3 = vcombine.high %v469_v16, %v470_v37  ;;  %v1973_v52 = vcombine.low %v469_v16, %v470_v37 }
  0x30   : > { %735 = vmatprep.mubr.bf16.mxu0 %v1962_v32  ;;  %2297 = vset.pattern.permute.xlu1 %v2460_v0  ;;  %v2338_v0 = vld [vmem:[%s2932_s4 + $0x58] sm:$0xff]  }
  0x31   : > { %2205 = vmatprep.subr.bf16.mxu1 %v2330_v61 }
  0x32   : > { %960 = vadd.xlane.f32.xlu1 %v959_v33  ;;  %957 = vadd.xlane.f32.xlu0 %v956_v38 }
  0x33   : > { %2206 = vmatpush3.bf16.msra.mxu1 %v2331_v1 }
  0x34   : > { %2207 = vmatprep.subr.bf16.mxu1 %v2332_v4  ;;  %v838_v4 = vld [vmem:[#allocation3 + $0x70] sm:$0xff] }
  0x36   : > { %966 = vadd.xlane.f32.xlu1 %v965_v17  ;;  %963 = vadd.xlane.f32.xlu0 %v962_v46  ;;  %v833_v17 = vld [vmem:[#allocation3 + $0x48] sm:$0xff] }
  0x37   : > { %736 = vmatmul.mubr.bf16.gmra.mxu0 %v1961_v50  ;;  %2208 = vmatpush3.bf16.msra.mxu1 %v2333_v5  ;;  %v1256_v5 = vld [vmem:[%s2745_s15] sm:$0xf] }
  0x38   : > { %743 = vmatprep.mubr.bf16.mxu0 %v1964_v55  ;;  %2209 = vmatprep.subr.bf16.mxu1 %v2334_v6  ;;  %v834_v55 = vld [vmem:[#allocation3 + $0x50] sm:$0xff]  ;;  %1272 = vst [vmem:[#allocation4 + $0x4] sm:$0xf] %v1256_v5 }
  0x3a   : > { %972 = vadd.xlane.f32.xlu1 %v971_v56  ;;  %969 = vadd.xlane.f32.xlu0 %v968_v57 }
  0x3b   : > { %2210 = vmatpush3.bf16.msra.mxu1 %v2335_v7 }
  0x3c   : > { %2211 = vmatprep.subr.bf16.mxu1 %v2336_v8  ;;  %v2340_v8 = vld [vmem:[%s2932_s4 + $0x50] sm:$0xff]  }
  0x3e   : > { %978 = vadd.xlane.f32.xlu1 %v977_v60  ;;  %975 = vadd.xlane.f32.xlu0 %v974_v30  ;;  %v2337_v60 = vld [vmem:[%s2932_s4 + $0x20] sm:$0xff]  }
  0x3f   : > { %744 = vmatmul.mubr.bf16.gmra.mxu0 %v1963_v22  ;;  %2212 = vmatpush3.bf16.msra.mxu1 %v2337_v60 }
  0x40   : > { %751 = vmatprep.mubr.bf16.mxu0 %v1966_v23  ;;  %v837_v23 = vld [vmem:[#allocation3 + $0x68] sm:$0xff]  ;;  %2213 = vmatprep.subr.bf16.mxu1 %v2338_v0 }
  0x47   : > { %752 = vmatmul.mubr.bf16.gmra.mxu0 %v1965_v62  ;;  %v836_v62 = vld [vmem:[#allocation3 + $0x60] sm:$0xff] }
  0x48   : > { %759 = vmatprep.mubr.bf16.mxu0 %v1968_v63 }
  0x4f   : > { %760 = vmatmul.mubr.bf16.gmra.mxu0 %v1967_v27 }
  0x50   : > { %767 = vmatprep.mubr.bf16.mxu0 %v1970_v31 }
  0x57   : > { %768 = vmatmul.mubr.bf16.gmra.mxu0 %v1969_v2 }
  0x58   : > { %775 = vmatprep.mubr.bf16.mxu0 %v1972_v44  ;;  %v2339_v44 = vld [vmem:[%s2932_s4 + $0x18] sm:$0xff]  }
  0x59   : > { %2214 = vmatpush3.bf16.msra.mxu1 %v2339_v44 }
  0x5a   : > { %2215 = vmatprep.subr.bf16.mxu1 %v2340_v8 }
  0x5f   : > { %776 = vmatmul.mubr.bf16.gmra.mxu0 %v1971_v53 }
  0x60   : > { %783 = vmatprep.mubr.bf16.mxu0 %v1974_v3  ;;  %v839_v3 = vld [vmem:[#allocation3 + $0x78] sm:$0xff] }
  0x67   : > { %784 = vmatmul.mubr.bf16.gmra.mxu0 %v1973_v52 }
  0xab   : > { %v940_v11 = vpop.xlane.xlu1 %939  ;;  %v934_v12 = vpop.xlane.xlu0 %933 }
  0xac   : > { %v982_v13 = vadd.f32 %v940_v11, %v826_v9  ;;  %v980_v14 = vadd.f32 %v934_v12, %v824_v10  ;;  %v2341_v12 = vld [vmem:[%s2932_s4 + $0x10] sm:$0xff]  }
  0xad   : > { %2216 = vmatpush3.bf16.msra.mxu1 %v2341_v12 }
  0xae   : > { %999 = vst.msk [vmem:[#allocation3 + $0x10] sm:$0xff] %vm438_vm0, %v982_v13  ;;  %997 = vst.msk [vmem:[#allocation3] sm:$0xff] %vm438_vm0, %v980_v14 }
  0xaf   : > { %v943_v19 = vpop.xlane.xlu1 %942  ;;  %v937_v20 = vpop.xlane.xlu0 %936 }
  0xb0   : > { %v983_v21 = vadd.f32 %v943_v19, %v827_v15  ;;  %v981_v24 = vadd.f32 %v937_v20, %v825_v18  ;;  %v1257_v19 = vld [vmem:[%s2745_s15 + $0x4] sm:$0xf] }
  0xb1   : > { %1273 = vst [vmem:[#allocation4 + $0xc] sm:$0xf] %v1257_v19 }
  0xb2   : > { %1000 = vst.msk [vmem:[#allocation3 + $0x18] sm:$0xff] %vm438_vm0, %v983_v21  ;;  %998 = vst.msk [vmem:[#allocation3 + $0x8] sm:$0xff] %vm438_vm0, %v981_v24  ;;  %v2342_v24 = vld [vmem:[%s2932_s4 + $0x48] sm:$0xff]  }
  0xb3   : > { %v949_v28 = vpop.xlane.xlu1 %948  ;;  %v946_v29 = vpop.xlane.xlu0 %945  ;;  %2217 = vmatprep.subr.bf16.mxu1 %v2342_v24 }
  0xb4   : > { %v985_v32 = vadd.f32 %v949_v28, %v829_v25  ;;  %v984_v33 = vadd.f32 %v946_v29, %v828_v26  ;;  %v2343_v28 = vld [vmem:[%s2932_s4 + $0x8] sm:$0xff]  }
  0xb5   : > { %v1016_v36 = vld [vmem:[#allocation3] sm:$0xff]  ;;  %v1018_v40 = vld [vmem:[#allocation3 + $0x10] sm:$0xff]  ;;  %2218 = vmatpush3.bf16.msra.mxu1 %v2343_v28 }
  0xb6   : > { %1002 = vst.msk [vmem:[#allocation3 + $0x28] sm:$0xff] %vm438_vm0, %v985_v32  ;;  %1001 = vst.msk [vmem:[#allocation3 + $0x20] sm:$0xff] %vm438_vm0, %v984_v33  ;;  %v1032_v37 = vmax.f32 %v1016_v36, 1.0  ;;  %v1034_v46 = vmax.f32 %v1018_v40, 1.0  ;;  %v1258_v32 = vld [vmem:[%s2745_s15 + $0x8] sm:$0xf] }
  0xb7   : > { %v955_v38 = vpop.xlane.xlu1 %954  ;;  %v952_v39 = vpop.xlane.xlu0 %951  ;;  %1274 = vst [vmem:[#allocation4 + $0x14] sm:$0xf] %v1258_v32  ;;  %v1259_v40 = vld [vmem:[%s2745_s15 + $0xc] sm:$0xf] }
  0xb8   : > { %v987_v41 = vadd.f32 %v955_v38, %v831_v34  ;;  %v986_v16 = vadd.f32 %v952_v39, %v830_v35  ;;  %2370 = vrcp.f32 %v1032_v37  ;;  %v2344_v35 = vld [vmem:[%s2932_s4 + $0x40] sm:$0xff]   ;;  %1275 = vst [vmem:[#allocation4 + $0x1c] sm:$0xf] %v1259_v40 }
  0xb9   : > { %v1017_v42 = vld [vmem:[#allocation3 + $0x8] sm:$0xff]  ;;  %v1019_v49 = vld [vmem:[#allocation3 + $0x18] sm:$0xff]  ;;  %2219 = vmatprep.subr.bf16.mxu1 %v2344_v35 }
  0xba   : > { %1004 = vst.msk [vmem:[#allocation3 + $0x38] sm:$0xff] %vm438_vm0, %v987_v41  ;;  %1003 = vst.msk [vmem:[#allocation3 + $0x30] sm:$0xff] %vm438_vm0, %v986_v16  ;;  %v1033_v45 = vmax.f32 %v1017_v42, 1.0  ;;  %v1035_v56 = vmax.f32 %v1019_v49, 1.0  ;;  %v2345_v38 = vld [vmem:[%s2932_s4] sm:$0xff]  }
  0xbb   : > { %v961_v47 = vpop.xlane.xlu1 %960  ;;  %v958_v48 = vpop.xlane.xlu0 %957  ;;  %2220 = vmatpush3.bf16.msra.mxu1 %v2345_v38 }
  0xbc   : > { %v989_v50 = vadd.f32 %v961_v47, %v833_v17  ;;  %2372 = vrcp.f32 %v1033_v45  ;;  %v988_v51 = vadd.f32 %v958_v48, %v832_v43  ;;  %v1260_v45 = vld [vmem:[%s2745_s15 + $0x10] sm:$0xf] }
  0xbd   : > { %2374 = vrcp.f32 %v1034_v46  ;;  %v1020_v59 = vld [vmem:[#allocation3 + $0x20] sm:$0xff]  ;;  %v1021_v2 = vld [vmem:[#allocation3 + $0x28] sm:$0xff]  ;;  %1276 = vst [vmem:[#allocation4 + $0x24] sm:$0xf] %v1260_v45 }
  0xbe   : > { %1006 = vst.msk [vmem:[#allocation3 + $0x48] sm:$0xff] %vm438_vm0, %v989_v50  ;;  %1005 = vst.msk [vmem:[#allocation3 + $0x40] sm:$0xff] %vm438_vm0, %v988_v51  ;;  %2376 = vrcp.f32 %v1035_v56  ;;  %v1036_v63 = vmax.f32 %v1020_v59, 1.0  ;;  %v1037_v7 = vmax.f32 %v1021_v2, 1.0  ;;  %v1265_v46 = vld [vmem:[%s2745_s15 + $0x24] sm:$0xf] }
  0xbf   : > { %v967_v57 = vpop.xlane.xlu1 %966  ;;  %v964_v58 = vpop.xlane.xlu0 %963  ;;  %1281 = vst [vmem:[#allocation4 + $0x4c] sm:$0xf] %v1265_v46  ;;  %v1261_v51 = vld [vmem:[%s2745_s15 + $0x14] sm:$0xf]  ;;  %v1262_v59 = vld [vmem:[%s2745_s15 + $0x18] sm:$0xf] }
  0xc0   : > { %v991_v30 = vadd.f32 %v967_v57, %v835_v54  ;;  %v990_v22 = vadd.f32 %v964_v58, %v834_v55  ;;  %2378 = vrcp.f32 %v1036_v63  ;;  %v1267_v54 = vld [vmem:[%s2745_s15 + $0x2c] sm:$0xf]  ;;  %1277 = vst [vmem:[#allocation4 + $0x2c] sm:$0xf] %v1261_v51  ;;  %1278 = vst [vmem:[#allocation4 + $0x34] sm:$0xf] %v1262_v59 }
  0xc1   : > { %v1022_v11 = vld [vmem:[#allocation3 + $0x30] sm:$0xff]  ;;  %v1023_v26 = vld [vmem:[#allocation3 + $0x38] sm:$0xff]  ;;  %1283 = vst [vmem:[#allocation4 + $0x5c] sm:$0xf] %v1267_v54  ;;  %v1271_v63 = vld [vmem:[%s2745_s15 + $0x3c] sm:$0xf] }
  0xc2   : > { %1008 = vst.msk [vmem:[#allocation3 + $0x58] sm:$0xff] %vm438_vm0, %v991_v30  ;;  %1007 = vst.msk [vmem:[#allocation3 + $0x50] sm:$0xff] %vm438_vm0, %v990_v22  ;;  %v1038_v21 = vmax.f32 %v1022_v11, 1.0  ;;  %v1039_v34 = vmax.f32 %v1023_v26, 1.0  ;;  %v1269_v30 = vld [vmem:[%s2745_s15 + $0x34] sm:$0xf] }
  0xc3   : > { %v973_v27 = vpop.xlane.xlu1 %972  ;;  %v970_v31 = vpop.xlane.xlu0 %969  ;;  %1285 = vst [vmem:[#allocation4 + $0x6c] sm:$0xf] %v1269_v30  ;;  %1287 = vst [vmem:[#allocation4 + $0x7c] sm:$0xf] %v1271_v63  ;;  %v1266_v2 = vld [vmem:[%s2745_s15 + $0x28] sm:$0xf] }
  0xc4   : > { %v993_v53 = vadd.f32 %v973_v27, %v837_v23  ;;  %v992_v52 = vadd.f32 %v970_v31, %v836_v62  ;;  %v1263_v62 = vld [vmem:[%s2745_s15 + $0x1c] sm:$0xf]  ;;  %v1264_v27 = vld [vmem:[%s2745_s15 + $0x20] sm:$0xf]  ;;  %1282 = vst [vmem:[#allocation4 + $0x54] sm:$0xf] %v1266_v2 }
  0xc5   : > { %v2371_v61 = vpop.eup %2370  ;;  %v1025_v1 = vld [vmem:[#allocation3 + $0x48] sm:$0xff]  ;;  %v1024_v37 = vld [vmem:[#allocation3 + $0x40] sm:$0xff]  ;;  %1279 = vst [vmem:[#allocation4 + $0x3c] sm:$0xf] %v1263_v62  ;;  %1280 = vst [vmem:[#allocation4 + $0x44] sm:$0xf] %v1264_v27 }
  0xc6   : > { %1010 = vst.msk [vmem:[#allocation3 + $0x68] sm:$0xff] %vm438_vm0, %v993_v53  ;;  %1082 = vperm.xlu0 %2296, %v2371_v61   ;;  %1009 = vst.msk [vmem:[#allocation3 + $0x60] sm:$0xff] %vm438_vm0, %v992_v52  ;;  %v1041_v6 = vmax.f32 %v1025_v1, 1.0  ;;  %v1040_v16 = vmax.f32 %v1024_v37, 1.0  ;;  %v1268_v53 = vld [vmem:[%s2745_s15 + $0x30] sm:$0xf] }
  0xc7   : > { %v979_v9 = vpop.xlane.xlu1 %978  ;;  %v976_v10 = vpop.xlane.xlu0 %975  ;;  %1284 = vst [vmem:[#allocation4 + $0x64] sm:$0xf] %v1268_v53  ;;  %v1270_v1 = vld [vmem:[%s2745_s15 + $0x38] sm:$0xf]  ;;  %v2348_v30 = vld [vmem:[#allocation4 + $0x4] ss:$8 sps:$4 sm:$0xff]  }
  0xc8   : > { %v995_v13 = vadd.f32 %v979_v9, %v839_v3  ;;  %2380 = vrcp.f32 %v1041_v6  ;;  %v994_v14 = vadd.f32 %v976_v10, %v838_v4  ;;  %1286 = vst [vmem:[#allocation4 + $0x74] sm:$0xf] %v1270_v1  ;;  %1551 = vmatprep.mubr.bf16.mxu1 %v2348_v30 }
  0xc9   : > { %v2373_v15 = vpop.eup %2372  ;;  %v1027_v18 = vld [vmem:[#allocation3 + $0x58] sm:$0xff]  ;;  %2382 = vrcp.f32 %v1037_v7  ;;  %v1026_v42 = vld [vmem:[#allocation3 + $0x50] sm:$0xff] }
  0xca   : > { %1012 = vst.msk [vmem:[#allocation3 + $0x78] sm:$0xff] %vm438_vm0, %v995_v13  ;;  %1087 = vperm.xlu1 %2297, %v2373_v15   ;;  %1011 = vst.msk [vmem:[#allocation3 + $0x70] sm:$0xff] %vm438_vm0, %v994_v14  ;;  %v1043_v20 = vmax.f32 %v1027_v18, 1.0  ;;  %v2375_v25 = vpop.eup %2374  ;;  %v1042_v47 = vmax.f32 %v1026_v42, 1.0 }
  0xcb   : > { %v2377_v36 = vpop.eup %2376 }
  0xcc   : > { %2384 = vrcp.f32 %v1043_v20 }
  0xcd   : > { %v1029_v29 = vld [vmem:[#allocation3 + $0x68] sm:$0xff]  ;;  %2386 = vrcp.f32 %v1038_v21  ;;  %v2379_v17 = vpop.eup %2378  ;;  %v1028_v49 = vld [vmem:[#allocation3 + $0x60] sm:$0xff] }
  0xce   : > { %1092 = vperm.xlu1 %2297, %v2375_v25   ;;  %v1045_v33 = vmax.f32 %v1029_v29, 1.0  ;;  %v1044_v55 = vmax.f32 %v1028_v49, 1.0 }
  0xd0   : > { %2388 = vrcp.f32 %v1045_v33 }
  0xd1   : > { %v1031_v39 = vld [vmem:[#allocation3 + $0x78] sm:$0xff]  ;;  %2390 = vrcp.f32 %v1039_v34  ;;  %v1030_v57 = vld [vmem:[#allocation3 + $0x70] sm:$0xff] }
  0xd2   : > { %1097 = vperm.xlu1 %2297, %v2377_v36   ;;  %v1047_v41 = vmax.f32 %v1031_v39, 1.0  ;;  %v1046_v60 = vmax.f32 %v1030_v57, 1.0 }
  0xd4   : > { %2392 = vrcp.f32 %v1047_v41 }
  0xd5   : > { %v2381_v43 = vpop.eup %2380  ;;  %2394 = vrcp.f32 %v1040_v16 }
  0xd6   : > { %1127 = vperm.xlu0 %2296, %v2381_v43   ;;  %1102 = vperm.xlu1 %2297, %v2379_v17   ;;  %v2383_v48 = vpop.eup %2382  ;;  %2396 = vrcp.f32 %v1042_v47 }
  0xd7   : > { %2398 = vrcp.f32 %v1044_v55 }
  0xd8   : > { %2400 = vrcp.f32 %v1046_v60 }
  0xd9   : > { %v2385_v50 = vpop.eup %2384 }
  0xda   : > { %1137 = vperm.xlu0 %2296, %v2385_v50   ;;  %1107 = vperm.xlu1 %2297, %v2383_v48   ;;  %v2387_v56 = vpop.eup %2386 }
  0xdd   : > { %v2389_v58 = vpop.eup %2388 }
  0xde   : > { %1147 = vperm.xlu0 %2296, %v2389_v58   ;;  %1112 = vperm.xlu1 %2297, %v2387_v56   ;;  %v2391_v22 = vpop.eup %2390 }
  0xe1   : > { %v2393_v23 = vpop.eup %2392 }
  0xe2   : > { %1157 = vperm.xlu0 %2296, %v2393_v23   ;;  %1117 = vperm.xlu1 %2297, %v2391_v22   ;;  %v2395_v0 = vpop.eup %2394 }
  0xe3   : > { %v2397_v31 = vpop.eup %2396 }
  0xe4   : > { %v2399_v44 = vpop.eup %2398 }
  0xe5   : > { %v2401_v3 = vpop.eup %2400 }
  0xe6   : > { %1122 = vperm.xlu1 %2297, %v2395_v0  }
  0xea   : > { %1132 = vperm.xlu1 %2297, %v2397_v31  }
  0xee   : > { %1142 = vperm.xlu1 %2297, %v2399_v44  }
  0xef   : > { %v2157_v52 = vpop.f32.mrf.mxu0 }
  0xf1   : > { %v2158_v61 = vpop.f32.mrf.mxu0 }
  0xf2   : > { %1152 = vperm.xlu1 %2297, %v2401_v3   ;;  %v2159_v35 = vadd.f32 %v2158_v61, %v2157_v52 }
  0xf3   : > { %v2160_v4 = vpop.f32.mrf.mxu0 }
  0xf5   : > { %v2161_v5 = vpop.f32.mrf.mxu0 }
  0xf6   : > { %v2162_v39 = vadd.f32 %v2161_v5, %v2160_v4 }
  0xf7   : > { %v2163_v6 = vpop.f32.mrf.mxu0 }
  0xf9   : > { %v2164_v7 = vpop.f32.mrf.mxu0 }
  0xfa   : > { %v2165_v42 = vadd.f32 %v2164_v7, %v2163_v6 }
  0xfb   : > { %v2166_v8 = vpop.f32.mrf.mxu0 }
  0xfd   : > { %v2167_v9 = vpop.f32.mrf.mxu0 }
  0xfe   : > { %v2168_v48 = vadd.f32 %v2167_v9, %v2166_v8  ;;  %v2349_v8 = vld [vmem:[#allocation4 + $0x14] ss:$8 sps:$4 sm:$0xff]  }
  0xff   : > { %v2169_v10 = vpop.f32.mrf.mxu0 }
 0x101   : > { %v2170_v11 = vpop.f32.mrf.mxu0 }
 0x102   : > { %v2171_v56 = vadd.f32 %v2170_v11, %v2169_v10 }
 0x103   : > { %v2172_v12 = vpop.f32.mrf.mxu0 }
 0x105   : > { %v2173_v13 = vpop.f32.mrf.mxu0 }
 0x106   : > { %v2174_v0 = vadd.f32 %v2173_v13, %v2172_v12 }
 0x107   : > { %v2175_v14 = vpop.f32.mrf.mxu0 }
 0x109   : > { %v2176_v15 = vpop.f32.mrf.mxu0 }
 0x10a   : > { %v2177_v1 = vadd.f32 %v2176_v15, %v2175_v14 }
 0x10b   : > { %v2793_v18 = vpop.f32.mrf.mxu0 }
 0x10d   : > { %v2795_v19 = vpop.f32.mrf.mxu0 }
 0x10e   : > { %v2180_v13 = vadd.f32 %v2795_v19, %v2793_v18 }
 0x10f   : > { %v2797_v20 = vpop.f32.mrf.mxu0 }
 0x111   : > { %v2799_v21 = vpop.f32.mrf.mxu0 }
 0x113   : > { %v2184_v24 = vpop.f32.mrf.mxu0 }
 0x115   : > { %v2185_v25 = vpop.f32.mrf.mxu0 }
 0x116   : > { %v2186_v51 = vadd.f32 %v2185_v25, %v2184_v24 }
 0x117   : > { %v2801_v26 = vpop.f32.mrf.mxu0 }
 0x119   : > { %v2803_v28 = vpop.f32.mrf.mxu0 }
 0x11a   : > { %v2189_v18 = vadd.f32 %v2803_v28, %v2801_v26 }
 0x11b   : > { %v2190_v29 = vpop.f32.mrf.mxu0 }
 0x11d   : > { %v2191_v32 = vpop.f32.mrf.mxu0 }
 0x11e   : > { %v2192_v22 = vadd.f32 %v2191_v32, %v2190_v29 }
 0x11f   : > { %v2805_v33 = vpop.f32.mrf.mxu0 }
 0x121   : > { %v2807_v34 = vpop.f32.mrf.mxu0 }
 0x123   : > { %v2196_v38 = vpop.f32.mrf.mxu0 }
 0x125   : > { %v2197_v17 = vpop.f32.mrf.mxu0 }
 0x126   : > { %v2198_v53 = vadd.f32 %v2197_v17, %v2196_v38  ;;  %v2195_v17 = vadd.f32 %v2807_v34, %v2805_v33 }
 0x127   : > { %v2809_v47 = vpop.f32.mrf.mxu0 }
 0x129   : > { %v2811_v55 = vpop.f32.mrf.mxu0 }
 0x12b   : > { %v2202_v63 = vpop.f32.mrf.mxu0 }
 0x12d   : > { %v2203_v61 = vpop.f32.mrf.mxu0 }
 0x12e   : > { %v2204_v12 = vadd.f32 %v2203_v61, %v2202_v63  ;;  %v2832_v63 = vld [vmem:[%s2934_s6] ss:$0 sm:$0xff] }
 0x141   : > { %v1083_v36 = vpop.permute.xlu0 %1082 }
 0x142   : > { %v1160_v37 = vmul.f32 %v2159_v35, %v1083_v36  ;;  %v2183_v35 = vadd.f32 %v2799_v21, %v2797_v20 }
 0x144   : > { %v2062_v40 = vpack.c.bf16 %v1160_v37, %v1160_v37 }
 0x145   : > { %v1088_v41 = vpop.permute.xlu1 %1087 }
 0x146   : > { %1240 = vst [vmem:[#allocation4] sm:$0xf] %v2062_v40  ;;  %v1161_v16 = vmul.f32 %v2162_v39, %v1088_v41  ;;  %v2352_v39 = vld [vmem:[#allocation4 + $0x24] ss:$8 sps:$4 sm:$0xff]  }
 0x148   : > { %v2063_v43 = vpack.c.bf16 %v1161_v16, %v1161_v16 }
 0x149   : > { %v1093_v45 = vpop.permute.xlu1 %1092 }
 0x14a   : > { %1241 = vst [vmem:[#allocation4 + $0x8] sm:$0xf] %v2063_v43  ;;  %v1162_v46 = vmul.f32 %v2165_v42, %v1093_v45  ;;  %v2355_v43 = vld [vmem:[#allocation4 + $0x34] ss:$8 sps:$4 sm:$0xff]  }
 0x14c   : > { %v2064_v49 = vpack.c.bf16 %v1162_v46, %v1162_v46  ;;  %v2201_v46 = vadd.f32 %v2811_v55, %v2809_v47  ;;  %v2367_v55 = vld [vmem:[#allocation4 + $0x74] ss:$8 sps:$4 sm:$0xff]  }
 0x14d   : > { %v1098_v50 = vpop.permute.xlu1 %1097 }
 0x14e   : > { %1242 = vst [vmem:[#allocation4 + $0x10] sm:$0xf] %v2064_v49  ;;  %v1163_v54 = vmul.f32 %v2168_v48, %v1098_v50  ;;  %v2358_v49 = vld [vmem:[#allocation4 + $0x44] ss:$8 sps:$4 sm:$0xff]  }
 0x150   : > { %v2065_v57 = vpack.c.bf16 %v1163_v54, %v1163_v54 }
 0x151   : > { %v1103_v58 = vpop.permute.xlu1 %1102  ;;  %v1128_v59 = vpop.permute.xlu0 %1127  ;;  %v2346_v60 = vld [vmem:[#allocation4] ss:$8 sps:$4 sm:$0xff]  }
 0x152   : > { %1243 = vst [vmem:[#allocation4 + $0x18] sm:$0xf] %v2065_v57  ;;  %v1164_v23 = vmul.f32 %v2171_v56, %v1103_v58  ;;  %v1169_v62 = vmul.f32 %v2186_v51, %v1128_v59  ;;  %1552 = vmatmul.mubr.bf16.vlgmr.msra.gmra.mxu1 %v2346_v60  ;;  %v2361_v51 = vld [vmem:[#allocation4 + $0x54] ss:$8 sps:$4 sm:$0xff]   ;;  %v2364_v56 = vld [vmem:[#allocation4 + $0x64] ss:$8 sps:$4 sm:$0xff]  }
 0x153   : > { %1559 = vmatprep.mubr.bf16.mxu1 %v2349_v8  ;;  %v2826_v59 = vld [vmem:[%s2933_s5] ss:$0 sm:$0xff] }
 0x154   : > { %v2066_v27 = vpack.c.bf16 %v1164_v23, %v1164_v23  ;;  %v2071_v31 = vpack.c.bf16 %v1169_v62, %v1169_v62 }
 0x155   : > { %v1108_v2 = vpop.permute.xlu1 %1107  ;;  %v1138_v44 = vpop.permute.xlu0 %1137 }
 0x156   : > { %1244 = vst [vmem:[#allocation4 + $0x20] sm:$0xf] %v2066_v27  ;;  %1249 = vst [vmem:[#allocation4 + $0x48] sm:$0xf] %v2071_v31  ;;  %v1165_v3 = vmul.f32 %v2174_v0, %v1108_v2  ;;  %v1171_v52 = vmul.f32 %v2192_v22, %v1138_v44 }
 0x158   : > { %v2067_v4 = vpack.c.bf16 %v1165_v3, %v1165_v3  ;;  %v2073_v5 = vpack.c.bf16 %v1171_v52, %v1171_v52 }
 0x159   : > { %v1113_v6 = vpop.permute.xlu1 %1112  ;;  %v1148_v7 = vpop.permute.xlu0 %1147  ;;  %v2351_v9 = vld [vmem:[#allocation4 + $0x10] ss:$8 sps:$4 sm:$0xff]  }
 0x15a   : > { %1245 = vst [vmem:[#allocation4 + $0x28] sm:$0xf] %v2067_v4  ;;  %1251 = vst [vmem:[#allocation4 + $0x58] sm:$0xf] %v2073_v5  ;;  %v1166_v10 = vmul.f32 %v2177_v1, %v1113_v6  ;;  %v1173_v11 = vmul.f32 %v2198_v53, %v1148_v7  ;;  %1560 = vmatmul.mubr.bf16.gmra.mxu1 %v2351_v9 }
 0x15b   : > { %1567 = vmatprep.mubr.bf16.mxu1 %v2352_v39 }
 0x15c   : > { %v2068_v24 = vpack.c.bf16 %v1166_v10, %v1166_v10  ;;  %v2075_v25 = vpack.c.bf16 %v1173_v11, %v1173_v11 }
 0x15d   : > { %v1118_v29 = vpop.permute.xlu1 %1117  ;;  %v1158_v14 = vpop.permute.xlu0 %1157 }
 0x15e   : > { %1246 = vst [vmem:[#allocation4 + $0x30] sm:$0xf] %v2068_v24  ;;  %1253 = vst [vmem:[#allocation4 + $0x68] sm:$0xf] %v2075_v25  ;;  %v1167_v15 = vmul.f32 %v2180_v13, %v1118_v29  ;;  %v1175_v32 = vmul.f32 %v2204_v12, %v1158_v14 }
 0x160   : > { %v2069_v36 = vpack.c.bf16 %v1167_v15, %v1167_v15  ;;  %v2077_v37 = vpack.c.bf16 %v1175_v32, %v1175_v32 }
 0x161   : > { %v1123_v38 = vpop.permute.xlu1 %1122  ;;  %v2354_v40 = vld [vmem:[#allocation4 + $0x20] ss:$8 sps:$4 sm:$0xff]  }
 0x162   : > { %1247 = vst [vmem:[#allocation4 + $0x38] sm:$0xf] %v2069_v36  ;;  %1255 = vst [vmem:[#allocation4 + $0x78] sm:$0xf] %v2077_v37  ;;  %v1168_v19 = vmul.f32 %v2183_v35, %v1123_v38  ;;  %1568 = vmatmul.mubr.bf16.gmra.mxu1 %v2354_v40 }
 0x163   : > { %1575 = vmatprep.mubr.bf16.mxu1 %v2355_v43 }
 0x164   : > { %v2070_v41 = vpack.c.bf16 %v1168_v19, %v1168_v19 }
 0x165   : > { %v1133_v16 = vpop.permute.xlu1 %1132 }
 0x166   : > { %1248 = vst [vmem:[#allocation4 + $0x40] sm:$0xf] %v2070_v41  ;;  %v1170_v20 = vmul.f32 %v2189_v18, %v1133_v16 }
 0x168   : > { %v2072_v21 = vpack.c.bf16 %v1170_v20, %v1170_v20 }
 0x169   : > { %v1143_v42 = vpop.permute.xlu1 %1142  ;;  %v2357_v45 = vld [vmem:[#allocation4 + $0x30] ss:$8 sps:$4 sm:$0xff]  }
 0x16a   : > { %1250 = vst [vmem:[#allocation4 + $0x50] sm:$0xf] %v2072_v21  ;;  %v1172_v26 = vmul.f32 %v2195_v17, %v1143_v42  ;;  %1576 = vmatmul.mubr.bf16.gmra.mxu1 %v2357_v45 }
 0x16b   : > { %1583 = vmatprep.mubr.bf16.mxu1 %v2358_v49 }
 0x16c   : > { %v2074_v28 = vpack.c.bf16 %v1172_v26, %v1172_v26 }
 0x16d   : > { %v1153_v48 = vpop.permute.xlu1 %1152  ;;  %v2360_v34 = vld [vmem:[#allocation4 + $0x40] ss:$8 sps:$4 sm:$0xff]  }
 0x16e   : > { %1252 = vst [vmem:[#allocation4 + $0x60] sm:$0xf] %v2074_v28  ;;  %v1174_v50 = vmul.f32 %v2201_v46, %v1153_v48 }
 0x170   : > { %v2076_v33 = vpack.c.bf16 %v1174_v50, %v1174_v50 }
 0x171   : > { %v2363_v54 = vld [vmem:[#allocation4 + $0x50] ss:$8 sps:$4 sm:$0xff]  }
 0x172   : > { %1254 = vst [vmem:[#allocation4 + $0x70] sm:$0xf] %v2076_v33  ;;  %1584 = vmatmul.mubr.bf16.gmra.mxu1 %v2360_v34 }
 0x173   : > { %1591 = vmatprep.mubr.bf16.mxu1 %v2361_v51 }
 0x175   : > { %v2366_v47 = vld [vmem:[#allocation4 + $0x60] ss:$8 sps:$4 sm:$0xff]  }
 0x179   : > { %v2369_v57 = vld [vmem:[#allocation4 + $0x70] ss:$8 sps:$4 sm:$0xff]  }
 0x17a   : > { %1592 = vmatmul.mubr.bf16.gmra.mxu1 %v2363_v54 }
 0x17b   : > { %1599 = vmatprep.mubr.bf16.mxu1 %v2364_v56 }
 0x182   : > { %1600 = vmatmul.mubr.bf16.gmra.mxu1 %v2366_v47 }
 0x183   : > { %1607 = vmatprep.mubr.bf16.mxu1 %v2367_v55 }
 0x18a   : > { %1608 = vmatmul.mubr.bf16.gmra.mxu1 %v2369_v57 }
 0x212   : > { %v2221_v58 = vpop.f32.mrf.mxu1 }
 0x214   : > { %v2222_v60 = vpop.f32.mrf.mxu1 }
 0x215   : > { %v2223_v30 = vadd.f32 %v2222_v60, %v2221_v58 }
 0x216   : > { %v2224_v22 = vpop.f32.mrf.mxu1 }
 0x217   : > { %v1554_v23 = vadd.f32 %v2223_v30, %v2826_v59 }
 0x218   : > { %v2225_v62 = vpop.f32.mrf.mxu1 }
 0x219   : > { %v1616_v0 = vmax.f32 %v1554_v23, 0.0  ;;  %v2226_v27 = vadd.f32 %v2225_v62, %v2224_v22 }
 0x21a   : > { %v2227_v31 = vpop.f32.mrf.mxu1 }
 0x21b   : > { %v1557_v2 = vadd.f32 %v2226_v27, %v2826_v59  ;;  %v1719_v44 = vmul.f32 %v2832_v63, %v1616_v0 }
 0x21c   : > { %v2228_v53 = vpop.f32.mrf.mxu1 }
 0x21d   : > { %v1617_v3 = vmax.f32 %v1557_v2, 0.0  ;;  %v2229_v52 = vadd.f32 %v2228_v53, %v2227_v31  ;;  %1735 = vadd.xlane.f32.xlu1 %v1719_v44 }
 0x21e   : > { %v2230_v61 = vpop.f32.mrf.mxu1 }
 0x21f   : > { %v2097_v1 = vpack.c.bf16 %v1617_v3, %v1616_v0  ;;  %v1562_v4 = vadd.f32 %v2229_v52, %v2826_v59  ;;  %v1720_v5 = vmul.f32 %v2832_v63, %v1617_v3 }
 0x220   : > { %v2231_v6 = vpop.f32.mrf.mxu1 }
 0x221   : > { %2098 = vst [vmem:[%s2841_s23] sm:$0xff] %v2097_v1   ;;  %v1618_v7 = vmax.f32 %v1562_v4, 0.0  ;;  %v2232_v8 = vadd.f32 %v2231_v6, %v2230_v61  ;;  %1737 = vadd.xlane.f32.xlu0 %v1720_v5 }
 0x222   : > { %v2233_v9 = vpop.f32.mrf.mxu1 }
 0x223   : > { %v1565_v10 = vadd.f32 %v2232_v8, %v2826_v59  ;;  %v1721_v11 = vmul.f32 %v2832_v63, %v1618_v7 }
 0x224   : > { %v2234_v12 = vpop.f32.mrf.mxu1 }
 0x225   : > { %v1619_v13 = vmax.f32 %v1565_v10, 0.0  ;;  %v2235_v24 = vadd.f32 %v2234_v12, %v2233_v9  ;;  %1739 = vadd.xlane.f32.xlu0 %v1721_v11 }
 0x226   : > { %v2236_v25 = vpop.f32.mrf.mxu1 }
 0x227   : > { %v2102_v29 = vpack.c.bf16 %v1619_v13, %v1618_v7  ;;  %v1570_v14 = vadd.f32 %v2235_v24, %v2826_v59  ;;  %v1722_v15 = vmul.f32 %v2832_v63, %v1619_v13 }
 0x228   : > { %v2237_v32 = vpop.f32.mrf.mxu1 }
 0x229   : > { %2134 = vst [vmem:[%s2841_s23 + $0x8] sm:$0xff] %v2102_v29   ;;  %v1620_v35 = vmax.f32 %v1570_v14, 0.0  ;;  %v2238_v36 = vadd.f32 %v2237_v32, %v2236_v25  ;;  %1741 = vadd.xlane.f32.xlu1 %v1722_v15 }
 0x22a   : > { %v2239_v37 = vpop.f32.mrf.mxu1 }
 0x22b   : > { %v1573_v38 = vadd.f32 %v2238_v36, %v2826_v59  ;;  %v1723_v39 = vmul.f32 %v2832_v63, %v1620_v35 }
 0x22c   : > { %v2240_v40 = vpop.f32.mrf.mxu1 }
 0x22d   : > { %v1621_v18 = vmax.f32 %v1573_v38, 0.0  ;;  %v2241_v19 = vadd.f32 %v2240_v40, %v2239_v37  ;;  %1743 = vadd.xlane.f32.xlu0 %v1723_v39 }
 0x22e   : > { %v2242_v41 = vpop.f32.mrf.mxu1 }
 0x22f   : > { %v2107_v16 = vpack.c.bf16 %v1621_v18, %v1620_v35  ;;  %v1578_v17 = vadd.f32 %v2241_v19, %v2826_v59  ;;  %v1724_v20 = vmul.f32 %v2832_v63, %v1621_v18 }
 0x230   : > { %v2243_v21 = vpop.f32.mrf.mxu1 }
 0x231   : > { %2135 = vst [vmem:[%s2841_s23 + $0x10] sm:$0xff] %v2107_v16   ;;  %v1622_v42 = vmax.f32 %v1578_v17, 0.0  ;;  %v2244_v43 = vadd.f32 %v2243_v21, %v2242_v41  ;;  %1745 = vadd.xlane.f32.xlu1 %v1724_v20 }
 0x232   : > { %v2245_v45 = vpop.f32.mrf.mxu1 }
 0x233   : > { %v1581_v46 = vadd.f32 %v2244_v43, %v2826_v59  ;;  %v1725_v26 = vmul.f32 %v2832_v63, %v1622_v42 }
 0x234   : > { %v2246_v28 = vpop.f32.mrf.mxu1 }
 0x235   : > { %v1623_v48 = vmax.f32 %v1581_v46, 0.0  ;;  %v2247_v49 = vadd.f32 %v2246_v28, %v2245_v45  ;;  %1747 = vadd.xlane.f32.xlu0 %v1725_v26 }
 0x236   : > { %v2248_v50 = vpop.f32.mrf.mxu1 }
 0x237   : > { %v2112_v33 = vpack.c.bf16 %v1623_v48, %v1622_v42  ;;  %v1586_v34 = vadd.f32 %v2247_v49, %v2826_v59  ;;  %v1726_v51 = vmul.f32 %v2832_v63, %v1623_v48 }
 0x238   : > { %v2249_v54 = vpop.f32.mrf.mxu1 }
 0x239   : > { %2136 = vst [vmem:[%s2841_s23 + $0x18] sm:$0xff] %v2112_v33   ;;  %v1624_v56 = vmax.f32 %v1586_v34, 0.0  ;;  %v2250_v47 = vadd.f32 %v2249_v54, %v2248_v50  ;;  %1749 = vadd.xlane.f32.xlu1 %v1726_v51 }
 0x23a   : > { %v2251_v55 = vpop.f32.mrf.mxu1 }
 0x23b   : > { %v1589_v57 = vadd.f32 %v2250_v47, %v2826_v59  ;;  %v1727_v58 = vmul.f32 %v2832_v63, %v1624_v56 }
 0x23c   : > { %v2252_v60 = vpop.f32.mrf.mxu1 }
 0x23d   : > { %v1625_v30 = vmax.f32 %v1589_v57, 0.0  ;;  %v2253_v22 = vadd.f32 %v2252_v60, %v2251_v55  ;;  %1751 = vadd.xlane.f32.xlu0 %v1727_v58 }
 0x23e   : > { %v2254_v23 = vpop.f32.mrf.mxu1 }
 0x23f   : > { %v2117_v62 = vpack.c.bf16 %v1625_v30, %v1624_v56  ;;  %v1594_v0 = vadd.f32 %v2253_v22, %v2826_v59  ;;  %v1728_v27 = vmul.f32 %v2832_v63, %v1625_v30 }
 0x240   : > { %v2255_v31 = vpop.f32.mrf.mxu1 }
 0x241   : > { %2137 = vst [vmem:[%s2841_s23 + $0x20] sm:$0xff] %v2117_v62   ;;  %v1626_v2 = vmax.f32 %v1594_v0, 0.0  ;;  %v2256_v44 = vadd.f32 %v2255_v31, %v2254_v23  ;;  %1753 = vadd.xlane.f32.xlu1 %v1728_v27 }
 0x242   : > { %v2257_v53 = vpop.f32.mrf.mxu1 }
 0x243   : > { %v1597_v3 = vadd.f32 %v2256_v44, %v2826_v59  ;;  %v1729_v52 = vmul.f32 %v2832_v63, %v1626_v2 }
 0x244   : > { %v2258_v61 = vpop.f32.mrf.mxu1 }
 0x245   : > { %v1627_v1 = vmax.f32 %v1597_v3, 0.0  ;;  %v2259_v4 = vadd.f32 %v2258_v61, %v2257_v53  ;;  %1755 = vadd.xlane.f32.xlu0 %v1729_v52 }
 0x246   : > { %v2260_v5 = vpop.f32.mrf.mxu1 }
 0x247   : > { %v2122_v6 = vpack.c.bf16 %v1627_v1, %v1626_v2  ;;  %v1602_v7 = vadd.f32 %v2259_v4, %v2826_v59  ;;  %v1730_v8 = vmul.f32 %v2832_v63, %v1627_v1 }
 0x248   : > { %v2261_v9 = vpop.f32.mrf.mxu1 }
 0x249   : > { %2138 = vst [vmem:[%s2841_s23 + $0x28] sm:$0xff] %v2122_v6   ;;  %v1628_v10 = vmax.f32 %v1602_v7, 0.0  ;;  %v2262_v11 = vadd.f32 %v2261_v9, %v2260_v5  ;;  %1757 = vadd.xlane.f32.xlu1 %v1730_v8 }
 0x24a   : > { %v2263_v12 = vpop.f32.mrf.mxu1 }
 0x24b   : > { %v1605_v13 = vadd.f32 %v2262_v11, %v2826_v59  ;;  %v1731_v24 = vmul.f32 %v2832_v63, %v1628_v10 }
 0x24c   : > { %v2264_v25 = vpop.f32.mrf.mxu1 }
 0x24d   : > { %v1629_v29 = vmax.f32 %v1605_v13, 0.0  ;;  %v2265_v14 = vadd.f32 %v2264_v25, %v2263_v12  ;;  %1759 = vadd.xlane.f32.xlu0 %v1731_v24 }
 0x24e   : > { %v2266_v15 = vpop.f32.mrf.mxu1 }
 0x24f   : > { %v2127_v32 = vpack.c.bf16 %v1629_v29, %v1628_v10  ;;  %v1610_v35 = vadd.f32 %v2265_v14, %v2826_v59  ;;  %v1732_v36 = vmul.f32 %v2832_v63, %v1629_v29 }
 0x250   : > { %v2267_v37 = vpop.f32.mrf.mxu1 }
 0x251   : > { %2139 = vst [vmem:[%s2841_s23 + $0x30] sm:$0xff] %v2127_v32   ;;  %v1630_v38 = vmax.f32 %v1610_v35, 0.0  ;;  %v2268_v39 = vadd.f32 %v2267_v37, %v2266_v15  ;;  %1761 = vadd.xlane.f32.xlu1 %v1732_v36 }
 0x253   : > { %v1613_v40 = vadd.f32 %v2268_v39, %v2826_v59  ;;  %v1733_v18 = vmul.f32 %v2832_v63, %v1630_v38 }
 0x255   : > { %v1631_v19 = vmax.f32 %v1613_v40, 0.0  ;;  %1763 = vadd.xlane.f32.xlu0 %v1733_v18 }
 0x257   : > { %v2132_v41 = vpack.c.bf16 %v1631_v19, %v1630_v38  ;;  %v1734_v16 = vmul.f32 %v2832_v63, %v1631_v19 }
 0x259   : > { %2140 = vst [vmem:[%s2841_s23 + $0x38] sm:$0xff] %v2132_v41   ;;  %1765 = vadd.xlane.f32.xlu1 %v1734_v16 }
 0x2a6   : > { %v1736_v17 = vpop.xlane.xlu1 %1735 }
 0x2a7   : > { %2402 = vtanh.f32 %v1736_v17 }
 0x2aa   : > { %v1738_v20 = vpop.xlane.xlu0 %1737 }
 0x2ab   : > { %2404 = vtanh.f32 %v1738_v20 }
 0x2ae   : > { %v1740_v21 = vpop.xlane.xlu0 %1739 }
 0x2af   : > { %2406 = vtanh.f32 %v1740_v21 }
 0x2b2   : > { %v1742_v59 = vpop.xlane.xlu1 %1741 }
 0x2b3   : > { %2408 = vtanh.f32 %v1742_v59 }
 0x2b4   : > { %v2403_v63 = vpop.eup %2402 }
 0x2b5   : > { %1783 = vst.msk [vmem:[%s2885_s26] sm:$0xff] %vm438_vm0, %v2403_v63 }
 0x2b6   : > { %v1744_v42 = vpop.xlane.xlu0 %1743 }
 0x2b7   : > { %2410 = vtanh.f32 %v1744_v42 }
 0x2b8   : > { %v2405_v43 = vpop.eup %2404 }
 0x2b9   : > { %1784 = vst.msk [vmem:[%s2885_s26 + $0x8] sm:$0xff] %vm438_vm0, %v2405_v43 }
 0x2ba   : > { %v1746_v45 = vpop.xlane.xlu1 %1745 }
 0x2bb   : > { %2412 = vtanh.f32 %v1746_v45 }
 0x2bc   : > { %v2407_v46 = vpop.eup %2406 }
 0x2bd   : > { %1785 = vst.msk [vmem:[%s2885_s26 + $0x10] sm:$0xff] %vm438_vm0, %v2407_v46 }
 0x2be   : > { %v1748_v26 = vpop.xlane.xlu0 %1747 }
 0x2bf   : > { %2414 = vtanh.f32 %v1748_v26 }
 0x2c0   : > { %v2409_v28 = vpop.eup %2408 }
 0x2c1   : > { %1786 = vst.msk [vmem:[%s2885_s26 + $0x18] sm:$0xff] %vm438_vm0, %v2409_v28 }
 0x2c2   : > { %v1750_v48 = vpop.xlane.xlu1 %1749 }
 0x2c3   : > { %2416 = vtanh.f32 %v1750_v48 }
 0x2c4   : > { %v2411_v49 = vpop.eup %2410 }
 0x2c5   : > { %1787 = vst.msk [vmem:[%s2885_s26 + $0x20] sm:$0xff] %vm438_vm0, %v2411_v49 }
 0x2c6   : > { %v1752_v50 = vpop.xlane.xlu0 %1751 }
 0x2c7   : > { %2418 = vtanh.f32 %v1752_v50 }
 0x2c8   : > { %v2413_v33 = vpop.eup %2412 }
 0x2c9   : > { %1788 = vst.msk [vmem:[%s2885_s26 + $0x28] sm:$0xff] %vm438_vm0, %v2413_v33 }
 0x2ca   : > { %v1754_v34 = vpop.xlane.xlu1 %1753 }
 0x2cb   : > { %2420 = vtanh.f32 %v1754_v34 }
 0x2cc   : > { %v2415_v51 = vpop.eup %2414 }
 0x2cd   : > { %1789 = vst.msk [vmem:[%s2885_s26 + $0x30] sm:$0xff] %vm438_vm0, %v2415_v51 }
 0x2ce   : > { %v1756_v54 = vpop.xlane.xlu0 %1755 }
 0x2cf   : > { %2422 = vtanh.f32 %v1756_v54 }
 0x2d0   : > { %v2417_v56 = vpop.eup %2416 }
 0x2d1   : > { %1790 = vst.msk [vmem:[%s2885_s26 + $0x38] sm:$0xff] %vm438_vm0, %v2417_v56 }
 0x2d2   : > { %v1758_v47 = vpop.xlane.xlu1 %1757 }
 0x2d3   : > { %2424 = vtanh.f32 %v1758_v47 }
 0x2d4   : > { %v2419_v55 = vpop.eup %2418 }
 0x2d5   : > { %1791 = vst.msk [vmem:[%s2885_s26 + $0x40] sm:$0xff] %vm438_vm0, %v2419_v55 }
 0x2d6   : > { %v1760_v57 = vpop.xlane.xlu0 %1759 }
 0x2d7   : > { %2426 = vtanh.f32 %v1760_v57 }
 0x2d8   : > { %v2421_v58 = vpop.eup %2420 }
 0x2d9   : > { %1792 = vst.msk [vmem:[%s2885_s26 + $0x48] sm:$0xff] %vm438_vm0, %v2421_v58 }
 0x2da   : > { %v1762_v60 = vpop.xlane.xlu1 %1761 }
 0x2db   : > { %2428 = vtanh.f32 %v1762_v60 }
 0x2dc   : > { %v2423_v30 = vpop.eup %2422 }
 0x2dd   : > { %1793 = vst.msk [vmem:[%s2885_s26 + $0x50] sm:$0xff] %vm438_vm0, %v2423_v30 }
 0x2de   : > { %v1764_v22 = vpop.xlane.xlu0 %1763 }
 0x2df   : > { %2430 = vtanh.f32 %v1764_v22 }
 0x2e0   : > { %v2425_v23 = vpop.eup %2424 }
 0x2e1   : > { %1794 = vst.msk [vmem:[%s2885_s26 + $0x58] sm:$0xff] %vm438_vm0, %v2425_v23 }
 0x2e2   : > { %v1766_v62 = vpop.xlane.xlu1 %1765 }
 0x2e3   : > { %2432 = vtanh.f32 %v1766_v62 }
 0x2e4   : > { %v2427_v0 = vpop.eup %2426 }
 0x2e5   : > { %1795 = vst.msk [vmem:[%s2885_s26 + $0x60] sm:$0xff] %vm438_vm0, %v2427_v0 }
 0x2e8   : > { %v2429_v27 = vpop.eup %2428 }
 0x2e9   : > { %1796 = vst.msk [vmem:[%s2885_s26 + $0x68] sm:$0xff] %vm438_vm0, %v2429_v27 }
 0x2ec   : > { %v2431_v31 = vpop.eup %2430 }
 0x2ed   : > { %1797 = vst.msk [vmem:[%s2885_s26 + $0x70] sm:$0xff] %vm438_vm0, %v2431_v31 }
 0x2f0   : > { %v2433_v2 = vpop.eup %2432 }
 0x2f1   : > { %1798 = vst.msk [vmem:[%s2885_s26 + $0x78] sm:$0xff] %vm438_vm0, %v2433_v2 }
 0x2f2 PF: > { %s19_s29 = sadd.s32 1, %s2456_s29   ;;  %s2937_s27 = smov %s2452_s28 }
 0x2f3   : > { %p16_p5 = scmp.ge.s32.totalorder %s19_s29, 4   ;;  %s2938_s28 = smov %s2940_s30 }
 0x2f5   :  { %18 = sbr.rel (!%p16_p5) target bundleno = 2 (0x2), region = 107 }

// kernel: net_forward.7
= control target key start
LH: loop header
LB: loop body
LE: loop exit
PB: predicated region body
PF: predicated region fallthrough
CT: control target
= control target key end

     0   :  { %v1165_v57 = vmov 0.0   ;;  %vm1166_vm0 = vmmov 0   ;;  %vm763_vm1 = vcmask 523264   ;;  %vm843_vm2 = vcmask 7168   ;;  %s1543_s1 = inlined_call_operand.vmem [shape: bf16[768,128], index: 1, kind: input, shape index: {}]   ;;  %s1544_s0 = inlined_call_operand.vmem [shape: bf16[8,768], index: 0, kind: input, shape index: {}]   ;;  %s1545_s2 = inlined_call_operand.vmem [shape: f32[128,128], index: 2, kind: input, shape index: {}]   ;;  %s1546_s4 = inlined_call_operand.vmem [shape: f32[128,64], index: 4, kind: input, shape index: {}]   ;;  %s1547_s6 = inlined_call_operand.vmem [shape: f32[64,1], index: 6, kind: input, shape index: {}]   ;;  %s1548_s3 = inlined_call_operand.vmem [shape: f32[1,128], index: 3, kind: input, shape index: {}]   ;;  %s1549_s7 = inlined_call_operand.<no memory space> [shape: f32[1,1], index: 7, kind: input, shape index: {}]   ;;  %s1550_s5 = inlined_call_operand.vmem [shape: f32[1,64], index: 5, kind: input, shape index: {}]   ;;  %s1551_s8 = inlined_call_operand.vmem [shape: f32[8,1], index: 8, kind: output, shape index: {}]  }
   0x1   :  { %v1107_v0 = vld [vmem:[%s1543_s1 + $0x78] sm:$0xff]   ;;  %v1111_v4 = vld [vmem:[%s1543_s1 + $0x70] sm:$0xff]   ;;  %v1115_v8 = vld [vmem:[%s1543_s1 + $0x68] sm:$0xff]  }
   0x2   :  { %v1108_v1 = vld [vmem:[%s1543_s1 + $0xf8] sm:$0xff]   ;;  %907 = vmatprep.subr.bf16.mxu0 %v1107_v0  ;;  %v1112_v5 = vld [vmem:[%s1543_s1 + $0xf0] sm:$0xff]   ;;  %v1116_v9 = vld [vmem:[%s1543_s1 + $0xe8] sm:$0xff]  }
   0x3   :  { %v1109_v2 = vld [vmem:[%s1543_s1 + $0x38] sm:$0xff]   ;;  %929 = vmatprep.subr.bf16.mxu1 %v1108_v1  ;;  %v1113_v6 = vld [vmem:[%s1543_s1 + $0x30] sm:$0xff]   ;;  %v1117_v10 = vld [vmem:[%s1543_s1 + $0x28] sm:$0xff]  }
   0x4   :  { %v1110_v3 = vld [vmem:[%s1543_s1 + $0xb8] sm:$0xff]   ;;  %908 = vmatpush3.bf16.msra.mxu0 %v1109_v2  ;;  %v1114_v7 = vld [vmem:[%s1543_s1 + $0xb0] sm:$0xff]   ;;  %v1118_v11 = vld [vmem:[%s1543_s1 + $0xa8] sm:$0xff]  }
   0x5   :  { %930 = vmatpush3.bf16.msra.mxu1 %v1110_v3  ;;  %909 = vmatprep.subr.bf16.mxu0 %v1111_v4  ;;  %v1119_v12 = vld [vmem:[%s1543_s1 + $0x60] sm:$0xff]   ;;  %v1123_v16 = vld [vmem:[%s1543_s1 + $0x58] sm:$0xff]   ;;  %v1127_v20 = vld [vmem:[%s1543_s1 + $0x50] sm:$0xff]  }
   0x6   :  { %931 = vmatprep.subr.bf16.mxu1 %v1112_v5  ;;  %v1120_v13 = vld [vmem:[%s1543_s1 + $0xe0] sm:$0xff]   ;;  %v1124_v17 = vld [vmem:[%s1543_s1 + $0xd8] sm:$0xff]   ;;  %v1128_v21 = vld [vmem:[%s1543_s1 + $0xd0] sm:$0xff]  }
   0x7   :  { %v1121_v14 = vld [vmem:[%s1543_s1 + $0x20] sm:$0xff]   ;;  %v1125_v18 = vld [vmem:[%s1543_s1 + $0x18] sm:$0xff]   ;;  %v1129_v22 = vld [vmem:[%s1543_s1 + $0x10] sm:$0xff]  }
   0x8   :  { %910 = vmatpush3.bf16.msra.mxu0 %v1113_v6  ;;  %v1122_v15 = vld [vmem:[%s1543_s1 + $0xa0] sm:$0xff]   ;;  %v1126_v19 = vld [vmem:[%s1543_s1 + $0x98] sm:$0xff]   ;;  %v1130_v23 = vld [vmem:[%s1543_s1 + $0x90] sm:$0xff]  }
   0x9   :  { %932 = vmatpush3.bf16.msra.mxu1 %v1114_v7  ;;  %911 = vmatprep.subr.bf16.mxu0 %v1115_v8  ;;  %v1131_v24 = vld [vmem:[%s1543_s1 + $0x48] sm:$0xff]   ;;  %v1135_v28 = vld [vmem:[%s1543_s1 + $0x40] sm:$0xff]   ;;  %v1143_v38 = vld [vmem:[%s1543_s1 + $0x178] sm:$0xff]  }
   0xa   :  { %933 = vmatprep.subr.bf16.mxu1 %v1116_v9  ;;  %v1132_v25 = vld [vmem:[%s1543_s1 + $0xc8] sm:$0xff]   ;;  %v1136_v29 = vld [vmem:[%s1543_s1 + $0xc0] sm:$0xff]   ;;  %v1144_v39 = vld [vmem:[%s1543_s1 + $0x138] sm:$0xff]  }
   0xb   :  { %v1133_v26 = vld [vmem:[%s1543_s1 + $0x8] sm:$0xff]   ;;  %v1137_v30 = vld [vmem:[%s1543_s1] sm:$0xff]   ;;  %v1145_v40 = vld [vmem:[%s1543_s1 + $0x170] sm:$0xff]  }
   0xc   :  { %912 = vmatpush3.bf16.msra.mxu0 %v1117_v10  ;;  %v1134_v27 = vld [vmem:[%s1543_s1 + $0x88] sm:$0xff]   ;;  %v1138_v31 = vld [vmem:[%s1543_s1 + $0x80] sm:$0xff]   ;;  %v1146_v41 = vld [vmem:[%s1543_s1 + $0x130] sm:$0xff]  }
   0xd   :  { %934 = vmatpush3.bf16.msra.mxu1 %v1118_v11  ;;  %913 = vmatprep.subr.bf16.mxu0 %v1119_v12  ;;  %v32_v32 = vld [vmem:[%s1544_s0] sm:$0xff]  ;;  %v33_v33 = vld [vmem:[%s1544_s0 + $0x8] sm:$0xff]  ;;  %v1151_v46 = vld [vmem:[%s1543_s1 + $0x158] sm:$0xff]  }
   0xe   :  { %935 = vmatprep.subr.bf16.mxu1 %v1120_v13  ;;  %v849_v34 = vcombine.low %v32_v32, %v32_v32  ;;  %v850_v35 = vcombine.high %v32_v32, %v32_v32  ;;  %v851_v36 = vcombine.low %v33_v33, %v33_v33  ;;  %v852_v37 = vcombine.high %v33_v33, %v33_v33  ;;  %v1147_v42 = vld [vmem:[%s1543_s1 + $0x168] sm:$0xff]   ;;  %v1149_v44 = vld [vmem:[%s1543_s1 + $0x160] sm:$0xff]   ;;  %v34_v47 = vld [vmem:[%s1544_s0 + $0x10] sm:$0xff] }
   0xf   :  { %v1148_v43 = vld [vmem:[%s1543_s1 + $0x128] sm:$0xff]   ;;  %v1150_v45 = vld [vmem:[%s1543_s1 + $0x120] sm:$0xff]   ;;  %v854_v48 = vcombine.high %v34_v47, %v34_v47  ;;  %v1152_v49 = vld [vmem:[%s1543_s1 + $0x118] sm:$0xff]   ;;  %v853_v56 = vcombine.low %v34_v47, %v34_v47 }
  0x10   :  { %914 = vmatpush3.bf16.msra.mxu0 %v1121_v14  ;;  %472 = vmatprep.mubr.bf16.mxu0 %v850_v35  ;;  %v1153_v50 = vld [vmem:[%s1543_s1 + $0x150] sm:$0xff]   ;;  %v1155_v52 = vld [vmem:[%s1543_s1 + $0x148] sm:$0xff]   ;;  %v1157_v54 = vld [vmem:[%s1543_s1 + $0x140] sm:$0xff]  }
  0x11   :  { %936 = vmatpush3.bf16.msra.mxu1 %v1122_v15  ;;  %915 = vmatprep.subr.bf16.mxu0 %v1123_v16  ;;  %v1154_v51 = vld [vmem:[%s1543_s1 + $0x110] sm:$0xff]   ;;  %v1156_v53 = vld [vmem:[%s1543_s1 + $0x108] sm:$0xff]   ;;  %v1158_v55 = vld [vmem:[%s1543_s1 + $0x100] sm:$0xff]  }
  0x12   :  { %937 = vmatprep.subr.bf16.mxu1 %v1124_v17  ;;  %512 = vmatprep.mubr.bf16.mxu1 %v852_v37  ;;  %v575_v58 = vld [vmem:[%s1545_s2 + $0x78] sm:$0xff]  ;;  %v574_v59 = vld [vmem:[%s1545_s2 + $0x70] sm:$0xff]  ;;  %v573_v60 = vld [vmem:[%s1545_s2 + $0x68] sm:$0xff] }
  0x13   :  { %v572_v61 = vld [vmem:[%s1545_s2 + $0x60] sm:$0xff]  ;;  %v571_v62 = vld [vmem:[%s1545_s2 + $0x58] sm:$0xff]  ;;  %v570_v63 = vld [vmem:[%s1545_s2 + $0x50] sm:$0xff] }
  0x14   :  { %916 = vmatpush3.bf16.msra.mxu0 %v1125_v18  ;;  %v569_v0 = vld [vmem:[%s1545_s2 + $0x48] sm:$0xff]  ;;  %v568_v1 = vld [vmem:[%s1545_s2 + $0x40] sm:$0xff]  ;;  %v567_v2 = vld [vmem:[%s1545_s2 + $0x38] sm:$0xff] }
  0x15   :  { %938 = vmatpush3.bf16.msra.mxu1 %v1126_v19  ;;  %917 = vmatprep.subr.bf16.mxu0 %v1127_v20  ;;  %v566_v3 = vld [vmem:[%s1545_s2 + $0x30] sm:$0xff]  ;;  %v565_v4 = vld [vmem:[%s1545_s2 + $0x28] sm:$0xff]  ;;  %v564_v5 = vld [vmem:[%s1545_s2 + $0x20] sm:$0xff] }
  0x16   :  { %939 = vmatprep.subr.bf16.mxu1 %v1128_v21  ;;  %v563_v6 = vld [vmem:[%s1545_s2 + $0x18] sm:$0xff]  ;;  %v562_v7 = vld [vmem:[%s1545_s2 + $0x10] sm:$0xff]  ;;  %v561_v8 = vld [vmem:[%s1545_s2 + $0x8] sm:$0xff] }
  0x17   :  { %v560_v9 = vld [vmem:[%s1545_s2] sm:$0xff]  ;;  %v669_v10 = vld [vmem:[%s1546_s4 + $0x78] sm:$0xff]  ;;  %v668_v11 = vld [vmem:[%s1546_s4 + $0x70] sm:$0xff] }
  0x18   :  { %918 = vmatpush3.bf16.msra.mxu0 %v1129_v22  ;;  %v667_v12 = vld [vmem:[%s1546_s4 + $0x68] sm:$0xff]  ;;  %v666_v13 = vld [vmem:[%s1546_s4 + $0x60] sm:$0xff]  ;;  %v665_v14 = vld [vmem:[%s1546_s4 + $0x58] sm:$0xff] }
  0x19   :  { %940 = vmatpush3.bf16.msra.mxu1 %v1130_v23  ;;  %919 = vmatprep.subr.bf16.mxu0 %v1131_v24  ;;  %v664_v15 = vld [vmem:[%s1546_s4 + $0x50] sm:$0xff]  ;;  %v663_v16 = vld [vmem:[%s1546_s4 + $0x48] sm:$0xff]  ;;  %v662_v17 = vld [vmem:[%s1546_s4 + $0x40] sm:$0xff] }
  0x1a   :  { %941 = vmatprep.subr.bf16.mxu1 %v1132_v25  ;;  %v661_v18 = vld [vmem:[%s1546_s4 + $0x38] sm:$0xff]  ;;  %v660_v19 = vld [vmem:[%s1546_s4 + $0x30] sm:$0xff]  ;;  %v659_v20 = vld [vmem:[%s1546_s4 + $0x28] sm:$0xff] }
  0x1b   :  { %v658_v21 = vld [vmem:[%s1546_s4 + $0x20] sm:$0xff]  ;;  %v657_v22 = vld [vmem:[%s1546_s4 + $0x18] sm:$0xff] }
  0x1c   :  { %920 = vmatpush3.bf16.msra.mxu0 %v1133_v26  ;;  %v751_v47 = vld [vmem:[%s1547_s6 + $0x18] sm:$0xff] }
  0x1d   :  { %942 = vmatpush3.bf16.msra.mxu1 %v1134_v27  ;;  %921 = vmatprep.subr.bf16.mxu0 %v1135_v28 }
  0x1e   :  { %943 = vmatprep.subr.bf16.mxu1 %v1136_v29 }
  0x20   :  { %922 = vmatpush3.bf16.msra.mxu0 %v1137_v30 }
  0x21   :  { %944 = vmatpush3.bf16.msra.mxu1 %v1138_v31  ;;  %951 = vmatprep.subr.bf16.mxu0 %v1143_v38 }
  0x22   :  { %1016 = vmatprep.subr.mxu1 %v1165_v57 }
  0x23   :  { %473 = vmatmul.mubr.bf16.vlgmr.msra.gmra.mxu0 %v849_v34 }
  0x24   :  { %513 = vmatmul.mubr.bf16.vlgmr.msra.gmra.mxu1 %v851_v36  ;;  %952 = vmatpush3.bf16.msra.mxu0 %v1144_v39 }
  0x25   :  { %953 = vmatprep.subr.bf16.mxu0 %v1145_v40  ;;  %552 = vmatprep.mubr.bf16.mxu0 %v854_v48  ;;  %v656_v40 = vld [vmem:[%s1546_s4 + $0x10] sm:$0xff]  ;;  %v903_v48 = vld [vmem:[%s1548_s3] ss:$0 sm:$0xff] }
  0x26   :  { %1017 = vmatpush3.msra.mxu1 %v575_v58  ;;  %1048 = vmatprep.mubr.msk.f32.mxu1 %vm1166_vm0, %v1165_v57  ;;  %v904_v58 = vld [vmem:[%s1550_s5] ss:$0 sm:$0xff] }
  0x27   :  { %1018 = vmatprep.subr.mxu1 %v1165_v57 }
  0x28   :  { %954 = vmatpush3.bf16.msra.mxu0 %v1146_v41  ;;  %1019 = vmatpush3.msra.mxu1 %v574_v59  ;;  %v655_v41 = vld [vmem:[%s1546_s4 + $0x8] sm:$0xff] }
  0x29   :  { %955 = vmatprep.subr.bf16.mxu0 %v1147_v42  ;;  %1020 = vmatprep.subr.mxu1 %v1165_v57  ;;  %v654_v42 = vld [vmem:[%s1546_s4] sm:$0xff] }
  0x2a   :  { %1021 = vmatpush3.msra.mxu1 %v573_v60 }
  0x2b   :  { %1022 = vmatprep.subr.mxu1 %v1165_v57 }
  0x2c   :  { %956 = vmatpush3.bf16.msra.mxu0 %v1148_v43  ;;  %1023 = vmatpush3.msra.mxu1 %v572_v61  ;;  %v755_v43 = vld [vmem:[%s1547_s6 + $0x38] sm:$0xff] }
  0x2d   :  { %957 = vmatprep.subr.bf16.mxu0 %v1149_v44  ;;  %1024 = vmatprep.subr.mxu1 %v1165_v57  ;;  %v754_v44 = vld [vmem:[%s1547_s6 + $0x30] sm:$0xff] }
  0x2e   :  { %1025 = vmatpush3.msra.mxu1 %v571_v62 }
  0x2f   :  { %1026 = vmatprep.subr.mxu1 %v1165_v57 }
  0x30   :  { %958 = vmatpush3.bf16.msra.mxu0 %v1150_v45  ;;  %1027 = vmatpush3.msra.mxu1 %v570_v63  ;;  %v753_v45 = vld [vmem:[%s1547_s6 + $0x28] sm:$0xff] }
  0x31   :  { %959 = vmatprep.subr.bf16.mxu0 %v1151_v46  ;;  %1028 = vmatprep.subr.mxu1 %v1165_v57  ;;  %v752_v46 = vld [vmem:[%s1547_s6 + $0x20] sm:$0xff] }
  0x32   :  { %1029 = vmatpush3.msra.mxu1 %v569_v0 }
  0x33   :  { %1030 = vmatprep.subr.mxu1 %v1165_v57 }
  0x34   :  { %960 = vmatpush3.bf16.msra.mxu0 %v1152_v49  ;;  %1031 = vmatpush3.msra.mxu1 %v568_v1 }
  0x35   :  { %961 = vmatprep.subr.bf16.mxu0 %v1153_v50  ;;  %1032 = vmatprep.subr.mxu1 %v1165_v57 }
  0x36   :  { %1033 = vmatpush3.msra.mxu1 %v567_v2 }
  0x37   :  { %1034 = vmatprep.subr.mxu1 %v1165_v57 }
  0x38   :  { %962 = vmatpush3.bf16.msra.mxu0 %v1154_v51  ;;  %1035 = vmatpush3.msra.mxu1 %v566_v3 }
  0x39   :  { %963 = vmatprep.subr.bf16.mxu0 %v1155_v52  ;;  %1036 = vmatprep.subr.mxu1 %v1165_v57 }
  0x3a   :  { %1037 = vmatpush3.msra.mxu1 %v565_v4 }
  0x3b   :  { %1038 = vmatprep.subr.mxu1 %v1165_v57 }
  0x3c   :  { %964 = vmatpush3.bf16.msra.mxu0 %v1156_v53  ;;  %1039 = vmatpush3.msra.mxu1 %v564_v5  ;;  %v750_v53 = vld [vmem:[%s1547_s6 + $0x10] sm:$0xff] }
  0x3d   :  { %965 = vmatprep.subr.bf16.mxu0 %v1157_v54  ;;  %1040 = vmatprep.subr.mxu1 %v1165_v57  ;;  %v749_v54 = vld [vmem:[%s1547_s6 + $0x8] sm:$0xff] }
  0x3e   :  { %1041 = vmatpush3.msra.mxu1 %v563_v6 }
  0x3f   :  { %1042 = vmatprep.subr.mxu1 %v1165_v57 }
  0x40   :  { %966 = vmatpush3.bf16.msra.mxu0 %v1158_v55  ;;  %1043 = vmatpush3.msra.mxu1 %v562_v7  ;;  %v748_v55 = vld [vmem:[%s1547_s6] sm:$0xff] }
  0x41   :  { %1051 = vmatprep.subr.mxu0 %v1165_v57  ;;  %1044 = vmatprep.subr.mxu1 %v1165_v57 }
  0x42   :  { %1045 = vmatpush3.msra.mxu1 %v561_v8 }
  0x43   :  { %553 = vmatmul.mubr.bf16.vlgmr.msra.gmra.mxu0 %v853_v56  ;;  %1046 = vmatprep.subr.mxu1 %v1165_v57  ;;  %v13_v56 = vstv %s1549_s7 }
  0x44   :  { %1047 = vmatpush3.msra.mxu1 %v560_v9  ;;  %1083 = vmatprep.mubr.msk.f32.mxu0 %vm1166_vm0, %v1165_v57  ;;  %14 = vst [vmem:[#allocation2] sm:$0x1] %v13_v56 }
  0x45   :  { %1086 = vmatprep.subr.mxu1 %v1165_v57  ;;  %1052 = vmatpush3.msra.mxu0 %v669_v10 }
  0x46   :  { %1053 = vmatprep.subr.mxu0 %v1165_v57 }
  0x47   :  { %1054 = vmatpush3.msra.mxu0 %v668_v11 }
  0x48   :  { %1055 = vmatprep.subr.mxu0 %v1165_v57 }
  0x49   :  { %1056 = vmatpush3.msra.mxu0 %v667_v12 }
  0x4a   :  { %1057 = vmatprep.subr.mxu0 %v1165_v57 }
  0x4b   :  { %1058 = vmatpush3.msra.mxu0 %v666_v13 }
  0x4c   :  { %1059 = vmatprep.subr.mxu0 %v1165_v57 }
  0x4d   :  { %1060 = vmatpush3.msra.mxu0 %v665_v14 }
  0x4e   :  { %1061 = vmatprep.subr.mxu0 %v1165_v57 }
  0x4f   :  { %1062 = vmatpush3.msra.mxu0 %v664_v15 }
  0x50   :  { %1063 = vmatprep.subr.mxu0 %v1165_v57 }
  0x51   :  { %1064 = vmatpush3.msra.mxu0 %v663_v16 }
  0x52   :  { %1065 = vmatprep.subr.mxu0 %v1165_v57 }
  0x53   :  { %1066 = vmatpush3.msra.mxu0 %v662_v17 }
  0x54   :  { %1067 = vmatprep.subr.mxu0 %v1165_v57 }
  0x55   :  { %1068 = vmatpush3.msra.mxu0 %v661_v18 }
  0x56   :  { %1069 = vmatprep.subr.mxu0 %v1165_v57 }
  0x57   :  { %1070 = vmatpush3.msra.mxu0 %v660_v19 }
  0x58   :  { %1071 = vmatprep.subr.mxu0 %v1165_v57 }
  0x59   :  { %1072 = vmatpush3.msra.mxu0 %v659_v20 }
  0x5a   :  { %1073 = vmatprep.subr.mxu0 %v1165_v57 }
  0x5b   :  { %1074 = vmatpush3.msra.mxu0 %v658_v21 }
  0x5c   :  { %1075 = vmatprep.subr.mxu0 %v1165_v57 }
  0x5d   :  { %1076 = vmatpush3.msra.mxu0 %v657_v22 }
  0x5e   :  { %1077 = vmatprep.subr.mxu0 %v1165_v57 }
  0x5f   :  { %1078 = vmatpush3.msra.mxu0 %v656_v40 }
  0x60   :  { %1079 = vmatprep.subr.mxu0 %v1165_v57 }
  0x61   :  { %1080 = vmatpush3.msra.mxu0 %v655_v41 }
  0x62   :  { %1081 = vmatprep.subr.mxu0 %v1165_v57 }
  0x63   :  { %1082 = vmatpush3.msra.mxu0 %v654_v42 }
  0xe3   :  { %v923_v23 = vpop.f32.mrf.mxu0 }
  0xe4   :  { %v945_v24 = vpop.f32.mrf.mxu1 }
  0xe5   :  { %v924_v25 = vpop.f32.mrf.mxu0 }
  0xe6   :  { %v946_v26 = vpop.f32.mrf.mxu1  ;;  %v925_v31 = vadd.f32 %v924_v25, %v923_v23 }
  0xe7   :  { %v926_v27 = vpop.f32.mrf.mxu0  ;;  %v947_v32 = vadd.f32 %v946_v26, %v945_v24 }
  0xe8   :  { %v948_v28 = vpop.f32.mrf.mxu1 }
  0xe9   :  { %v927_v29 = vpop.f32.mrf.mxu0  ;;  %v515_v35 = vadd.f32 %v947_v32, %v925_v31 }
  0xea   :  { %v949_v30 = vpop.f32.mrf.mxu1 }
 0x103   :  { %v967_v33 = vpop.f32.mrf.mxu0 }
 0x105   :  { %v968_v34 = vpop.f32.mrf.mxu0 }
 0x106   :  { %v969_v36 = vadd.f32 %v968_v34, %v967_v33 }
 0x107   :  { %v970_v37 = vpop.f32.mrf.mxu0 }
 0x108   :  { %v555_v38 = vadd.f32 %v969_v36, %v515_v35 }
 0x109   :  { %v971_v39 = vpop.f32.mrf.mxu0 }
 0x10a   :  { %1049 = vmatmul.mubr.f32.vlgmr.msra.gmra.mxu1 %v555_v38 }
 0x10b   :  { %1102 = vmatprep.mubr.msk.f32.mxu1 %vm1166_vm0, %v1165_v57  ;;  %1087 = vmatpush3.msra.mxu1 %v755_v43 }
 0x10c   :  { %1088 = vmatprep.subr.mxu1 %v1165_v57 }
 0x10d   :  { %1089 = vmatpush3.msra.mxu1 %v754_v44 }
 0x10e   :  { %1090 = vmatprep.subr.mxu1 %v1165_v57 }
 0x10f   :  { %1091 = vmatpush3.msra.mxu1 %v753_v45 }
 0x110   :  { %1092 = vmatprep.subr.mxu1 %v1165_v57 }
 0x111   :  { %1093 = vmatpush3.msra.mxu1 %v752_v46 }
 0x112   :  { %1094 = vmatprep.subr.mxu1 %v1165_v57 }
 0x113   :  { %1095 = vmatpush3.msra.mxu1 %v751_v47 }
 0x114   :  { %1096 = vmatprep.subr.mxu1 %v1165_v57 }
 0x115   :  { %1097 = vmatpush3.msra.mxu1 %v750_v53 }
 0x116   :  { %1098 = vmatprep.subr.mxu1 %v1165_v57 }
 0x117   :  { %1099 = vmatpush3.msra.mxu1 %v749_v54 }
 0x118   :  { %1100 = vmatprep.subr.mxu1 %v1165_v57  ;;  %v905_v57 = vld [vmem:[#allocation2] ss:$0 sm:$0xff] }
 0x119   :  { %1101 = vmatpush3.msra.mxu1 %v748_v55 }
 0x1ca   :  { %v649_v49 = vpop.f32.mrf.mxu1 }
 0x1cb   :  { %v650_v50 = vadd.f32 %v903_v48, %v649_v49 }
 0x1cc   :  { %v1050_v51 = vpop.f32.mrf.mxu1 }
 0x1cd   :  { %v653_v52 = vmax.f32 %v650_v50, 0.0 }
 0x1cf   :  { %1084 = vmatmul.mubr.f32.vlgmr.msra.gmra.mxu0 %v653_v52 }
 0x28f   :  { %v743_v59 = vpop.f32.mrf.mxu0 }
 0x290   :  { %v744_v60 = vadd.f32 %v904_v58, %v743_v59 }
 0x291   :  { %v1085_v61 = vpop.f32.mrf.mxu0 }
 0x292   :  { %v747_v62 = vmax.f32 %v744_v60, 0.0 }
 0x294   :  { %1103 = vmatmul.mubr.msk.f32.vlgmr.msra.gmra.mxu1 %vm763_vm1, %v747_v62 }
 0x354   :  { %v833_v63 = vpop.f32.mrf.mxu1 }
 0x355   :  { %v834_v0 = vadd.f32 %v905_v57, %v833_v63 }
 0x356   :  { %v1104_v1 = vpop.f32.mrf.mxu1 }
 0x357   :  { %v837_v2 = vsub.f32 0.0, %v834_v0 }
 0x359   :  { %v838_v3 = vmul.f32 1.442695, %v837_v2 }
 0x35b   :  { %1161 = vpow2.f32 %v838_v3 }
 0x368   :  { %v1162_v4 = vpop.eup %1161 }
 0x369   :  { %v840_v5 = vadd.f32 1.0, %v1162_v4 }
 0x36b   :  { %1163 = vrcp.f32 %v840_v5 }
 0x378   :  { %v1164_v6 = vpop.eup %1163 }
 0x379   :  { %844 = vst.msk [vmem:[%s1551_s8] sm:$0xff] %vm843_vm2, %v1164_v6 }

</bundles_post_ra>
